<compile_context>
chip_gen: v7x
topology: tpu7x:2x2x1
jax: 0.10.0
libtpu: 0.0.40
codegen_flags: <defaults>
</compile_context>

<pallas_src>
import functools

import jax
import jax.numpy as jnp
from jax import lax
from jax.experimental import pallas as pl
from jax.experimental.pallas import tpu as pltpu


def _round_up(x, m):
    return (x + m - 1) // m * m


def _largest_divisor_leq(n, cap):
    for d in range(min(n, cap), 0, -1):
        if n % d == 0:
            return d
    return 1


# ----------------------------------------------------------------------------
# conv3x3 + bias + ReLU on the persistent padded layout
# ----------------------------------------------------------------------------
_LEAD = 8  # aligned zero rows in front of the window (acts as the "col -1" pad)


def _conv_vmem_bytes(tr, Wpad, Cin, TC, itemsize):
    lw = tr * Wpad
    lbuf = lw + 2 * Wpad + 2 * _LEAD
    cin_l = max(Cin, 128)          # lane padding in VMEM
    tc_l = max(TC, 128)
    main = tr * Wpad * cin_l * itemsize
    halo = 2 * Wpad * cin_l * itemsize
    wts = 9 * _round_up(Cin, 8) * tc_l * itemsize
    bias = tc_l * 4
    outb = tr * Wpad * tc_l * itemsize
    rowv = tr * 8 * 128 * 4
    xwin = lbuf * cin_l * itemsize
    acc = lw * tc_l * 4
    return 2 * (main + halo + wts + bias + outb + rowv) + xwin + acc


def conv3x3_relu_padded(xp, w, b, *, H, W, row_tile=32, cout_tile=512,
                        vmem_budget=26 * 1024 * 1024):
    """relu(conv2d(padding=1) + b) on a padded-layout activation.

    xp: (N, Hr, Wpad, Cin); valid data at rows [0,H), cols [0,W); the rest of
        the array MUST be zero.  Wpad is a multiple of 8 and > W.
    w : (9, Cin, Cout), taps ordered (dy, dx) row-major (cross-correlation).
    b : (1, Cout) float32.
    Returns (N, Hr, Wpad, Cout) in xp.dtype with the same zero-pad invariant.
    """
    N, Hr, Wpad, Cin = xp.shape
    Cout = w.shape[-1]
    assert Wpad % 8 == 0 and W < Wpad and H <= Hr

    TC = _largest_divisor_leq(Cout, cout_tile)   # = Cout for all VGG layers
    C = Cout // TC
    itemsize = jnp.dtype(xp.dtype).itemsize

    # Largest row tile (divisor of Hr) whose working set fits the VMEM budget.
    TR = 1
    for tr in range(min(Hr, row_tile), 0, -1):
        if Hr % tr:
            continue
        TR = tr
        if _conv_vmem_bytes(tr, Wpad, Cin, TC, itemsize) <= vmem_budget:
            break
    R = Hr // TR
    LW = TR * Wpad
    LBUF = LW + 2 * Wpad + 2 * _LEAD

    taps = [(dy, dx) for dy in range(3) for dx in range(3)]

    def kernel(main_ref, hb_ref, ha_ref, w_ref, b_ref, rowv_ref, o_ref,
               xwin, acc):
        r = pl.program_id(2)
        last = pl.num_programs(2) - 1

        # ---- assemble the (TR+2)-row window (all scratch stores 8-aligned) -
        xwin[pl.ds(0, _LEAD), :] = jnp.zeros((_LEAD, Cin), xwin.dtype)

        @pl.when(r == 0)                      # halo row above = top padding
        def _():
            xwin[pl.ds(_LEAD, Wpad), :] = jnp.zeros((Wpad, Cin), xwin.dtype)

        @pl.when(r > 0)
        def _():
            xwin[pl.ds(_LEAD, Wpad), :] = hb_ref[0, 0]

        xwin[pl.ds(_LEAD + Wpad, LW), :] = main_ref[0].reshape(LW, Cin)

        @pl.when(r == last)                   # halo row below = bottom padding
        def _():
            xwin[pl.ds(_LEAD + Wpad + LW, Wpad), :] = jnp.zeros(
                (Wpad, Cin), xwin.dtype)

        @pl.when(r < last)
        def _():
            xwin[pl.ds(_LEAD + Wpad + LW, Wpad), :] = ha_ref[0, 0]

        xwin[pl.ds(_LEAD + Wpad + LW + Wpad, _LEAD), :] = jnp.zeros(
            (_LEAD, Cin), xwin.dtype)

        # ---- 9 shifted MXU matmuls accumulated in f32 ----------------------
        for t, (dy, dx) in enumerate(taps):
            start = _LEAD - 1 + dy * Wpad + dx          # static python int
            patch = xwin[pl.ds(start, LW), :]           # (LW, Cin)
            contrib = jnp.dot(patch, w_ref[t],
                              preferred_element_type=jnp.float32)
            if t == 0:
                acc[...] = contrib
            else:
                acc[...] += contrib

        # ---- bias + ReLU + pad-zeroing epilogue, lane-dense store ----------
        res = jnp.maximum(acc[...] + b_ref[...], 0.0)   # (LW, TC) f32
        res = res.reshape(TR, Wpad, TC)
        colmask = lax.broadcasted_iota(jnp.int32, (Wpad, 1), 0) < W
        res = jnp.where(colmask, res, 0.0)              # zero pad columns
        res = res * rowv_ref[...]                       # zero pad rows
        o_ref[0] = res.astype(o_ref.dtype)

    est = _conv_vmem_bytes(TR, Wpad, Cin, TC, itemsize)
    vmem_lim = min(max(int(est * 1.3) + 4 * 1024 * 1024, 32 * 1024 * 1024),
                   100 * 1024 * 1024)

    rowv = (jnp.arange(Hr, dtype=jnp.int32) < H).astype(jnp.float32)
    rowv = rowv.reshape(Hr, 1, 1)

    return pl.pallas_call(
        kernel,
        out_shape=jax.ShapeDtypeStruct((N, Hr, Wpad, Cout), xp.dtype),
        grid=(N, C, R),
        in_specs=[
            pl.BlockSpec((1, TR, Wpad, Cin), lambda n, c, r: (n, r, 0, 0)),
            pl.BlockSpec((1, 1, Wpad, Cin),
                         lambda n, c, r: (n, jnp.maximum(r * TR - 1, 0), 0, 0)),
            pl.BlockSpec((1, 1, Wpad, Cin),
                         lambda n, c, r: (n, jnp.minimum((r + 1) * TR, Hr - 1),
                                          0, 0)),
            pl.BlockSpec((9, Cin, TC), lambda n, c, r: (0, 0, c)),
            pl.BlockSpec((1, TC), lambda n, c, r: (0, c)),
            pl.BlockSpec((TR, 1, 1), lambda n, c, r: (r, 0, 0)),
        ],
        out_specs=pl.BlockSpec((1, TR, Wpad, TC), lambda n, c, r: (n, r, 0, c)),
        scratch_shapes=[
            pltpu.VMEM((LBUF, Cin), xp.dtype),      # assembled input window
            pltpu.VMEM((LW, TC), jnp.float32),      # f32 accumulator
        ],
        compiler_params=pltpu.CompilerParams(
            dimension_semantics=("parallel", "parallel", "arbitrary"),
            vmem_limit_bytes=vmem_lim),
    )(xp, xp, xp, w, b, rowv)


# ----------------------------------------------------------------------------
# 2x2 pooling (stride 2) on the padded layout
# ----------------------------------------------------------------------------
def _pool2x2_kernel(a_ref, b_ref, rowv_ref, o_ref, *, op, C, Wo, WG, Wpo, PR):
    a = a_ref[...]                                       # even rows
    b = b_ref[...]                                       # odd rows
    if op == "max":
        m = jnp.maximum(a, b)
        red = jnp.maximum(m[:, :, :C], m[:, :, C:]).astype(jnp.float32)
    else:  # avg
        s = a.astype(jnp.float32) + b.astype(jnp.float32)
        red = (s[:, :, :C] + s[:, :, C:]) * 0.25
    colmask = lax.broadcasted_iota(jnp.int32, (WG, 1), 0) < Wo
    red = jnp.where(colmask, red, 0.0)
    red = red * rowv_ref[...]
    red = red.astype(o_ref.dtype)
    cw = min(WG, Wpo)
    o_ref[:, :cw, :] = red[:, :cw, :]
    if Wpo > cw:
        o_ref[:, cw:, :] = jnp.zeros((PR, Wpo - cw, C), o_ref.dtype)


def pool2x2_padded(xp, *, H, W, op="max", row_tile=16):
    """2x2/stride-2 pool (PyTorch floor semantics) in the padded layout."""
    N, Hr, Wpad, C = xp.shape
    if Hr % 2:
        xp = jnp.pad(xp, ((0, 0), (0, 1), (0, 0), (0, 0)))
        Hr += 1
    Ho, Wo = H // 2, W // 2
    Hro = Hr // 2
    WG = Wpad // 2
    Wpo = _round_up(Wo + 1, 8)
    PR = _largest_divisor_leq(Hro, row_tile)
    # Row parity becomes its own (major) dim; column parity folds into lanes.
    xr = xp.reshape(N, Hro, 2, WG, 2 * C)
    rowv = (jnp.arange(Hro, dtype=jnp.int32) < Ho).astype(jnp.float32)
    rowv = rowv.reshape(Hro, 1, 1)
    kern = functools.partial(_pool2x2_kernel, op=op, C=C, Wo=Wo, WG=WG,
                             Wpo=Wpo, PR=PR)
    out = pl.pallas_call(
        kern,
        out_shape=jax.ShapeDtypeStruct((N, Hro, Wpo, C), xp.dtype),
        grid=(N, Hro // PR),
        in_specs=[
            pl.BlockSpec((None, PR, None, WG, 2 * C),
                         lambda n, j: (n, j, 0, 0, 0)),
            pl.BlockSpec((None, PR, None, WG, 2 * C),
                         lambda n, j: (n, j, 1, 0, 0)),
            pl.BlockSpec((PR, 1, 1), lambda n, j: (j, 0, 0)),
        ],
        out_specs=pl.BlockSpec((None, PR, Wpo, C), lambda n, j: (n, j, 0, 0)),
        compiler_params=pltpu.CompilerParams(
            dimension_semantics=("parallel", "parallel")),
    )(xr, xr, rowv)
    return out, Ho, Wo


# ----------------------------------------------------------------------------
# Model (parameters + forward), mirroring the PyTorch module
# ----------------------------------------------------------------------------
_VGG_LAYERS = [
    ("conv1_1", 3, 64), ("conv1_2", 64, 64),
    ("conv2_1", 64, 128), ("conv2_2", 128, 128),
    ("conv3_1", 128, 256), ("conv3_2", 256, 256),
    ("conv3_3", 256, 256), ("conv3_4", 256, 256),
    ("conv4_1", 256, 512), ("conv4_2", 512, 512),
    ("conv4_3", 512, 512), ("conv4_4", 512, 512),
    ("conv5_1", 512, 512), ("conv5_2", 512, 512),
    ("conv5_3", 512, 512), ("conv5_4", 512, 512),
]

_FORWARD_SPEC = [
    ("r11", "conv1_1"), ("r12", "conv1_2"), ("p1", None),
    ("r21", "conv2_1"), ("r22", "conv2_2"), ("p2", None),
    ("r31", "conv3_1"), ("r32", "conv3_2"), ("r33", "conv3_3"),
    ("r34", "conv3_4"), ("p3", None),
    ("r41", "conv4_1"), ("r42", "conv4_2"), ("r43", "conv4_3"),
    ("r44", "conv4_4"), ("p4", None),
    ("r51", "conv5_1"), ("r52", "conv5_2"), ("r53", "conv5_3"),
    ("r54", "conv5_4"), ("p5", None),
]


def init_params(key, ic=3, dtype=jnp.bfloat16):
    """Deterministic synthetic weights (Kaiming-style std), not a checkpoint."""
    params = {}
    layers = list(_VGG_LAYERS)
    layers[0] = ("conv1_1", ic, 64)
    for name, cin, cout in layers:
        key, kw, kb = jax.random.split(key, 3)
        std = (2.0 / (9.0 * cin)) ** 0.5
        w = jax.random.normal(kw, (3, 3, cin, cout), jnp.float32) * std
        b = jax.random.normal(kb, (1, cout), jnp.float32) * 0.01
        params[name] = (w.reshape(9, cin, cout).astype(dtype), b)
    return params


def vgg_preprocess(x, vgg_normal_correct=False):
    # CoCosNet vgg_preprocess: RGB[0,1] -> BGR, subtract mean, *255.
    if vgg_normal_correct:
        x = (x + 1.0) / 2.0
    x_bgr = jnp.concatenate([x[:, 2:3], x[:, 1:2], x[:, 0:1]], axis=1)
    mean = jnp.array([0.40760392, 0.45795686, 0.48501961],
                     dtype=x.dtype).reshape(1, 3, 1, 1)
    return (x_bgr - mean) * 255.0


@functools.partial(jax.jit,
                   static_argnames=("out_keys", "pool", "vgg_normal_correct",
                                    "preprocess"))
def vgg19_forward(params, x, out_keys, pool="max", vgg_normal_correct=False,
                  preprocess=True):
    if preprocess:
        x = vgg_preprocess(x, vgg_normal_correct)
    act_dtype = params["conv1_1"][0].dtype
    h = jnp.transpose(x, (0, 2, 3, 1)).astype(act_dtype)   # NCHW -> NHWC
    N, H, W, _ = h.shape
    Hr = _round_up(H, 32)                  # divisible-by-32 -> even through
    Wpad = _round_up(W + 1, 8)             # 5 pools; >=1 zero right column
    cur = jnp.pad(h, ((0, 0), (0, Hr - H), (0, Wpad - W), (0, 0)))

    feats = {}                             # key -> (padded act, H, W)
    ch, vw = H, W
    for key, layer in _FORWARD_SPEC:
        if layer is None:
            cur, ch, vw = pool2x2_padded(cur, H=ch, W=vw, op=pool)
        else:
            wgt, bias = params[layer]
            cur = conv3x3_relu_padded(cur, wgt, bias, H=ch, W=vw)
        feats[key] = (cur, ch, vw)

    # back to PyTorch NCHW / f32 convention only for requested keys
    return [jnp.transpose(feats[k][0][:, :feats[k][1], :feats[k][2], :],
                          (0, 3, 1, 2)).astype(jnp.float32)
            for k in out_keys]


class VGG19FeatureColorPallas:
    def __init__(self, params, pool="max", vgg_normal_correct=False):
        assert pool in ("max", "avg")
        self.params = params
        self.pool = pool
        self.vgg_normal_correct = vgg_normal_correct

    def __call__(self, x, out_keys, preprocess=True):
        return vgg19_forward(self.params, x, out_keys=tuple(out_keys),
                             pool=self.pool,
                             vgg_normal_correct=self.vgg_normal_correct,
                             preprocess=preprocess)


# TODO(synk): spectral_norm is imported but unused in the reference module.


# ----------------------------------------------------------------------------
# pure-JAX references + self-tests + demo
# ----------------------------------------------------------------------------
def _ref_conv3x3_relu(x, w, b):
    w4 = w.astype(jnp.float32).reshape(3, 3, w.shape[1], w.shape[2])
    y = lax.conv_general_dilated(
        x.astype(jnp.float32), w4, window_strides=(1, 1),
        padding=((1, 1), (1, 1)),
        dimension_numbers=("NHWC", "HWIO", "NHWC"))
    return jnp.maximum(y + b.reshape(1, 1, 1, -1), 0.0)


def _ref_pool(x, op):
    if op == "max":
        return lax.reduce_window(x, -jnp.inf, lax.max,
                                 (1, 2, 2, 1), (1, 2, 2, 1), "VALID")
    s = lax.reduce_window(x, 0.0, lax.add, (1, 2, 2, 1), (1, 2, 2, 1), "VALID")
    return s * 0.25


def _ref_vgg_forward(params, x, out_keys, pool="max", vgg_normal_correct=False,
                     preprocess=True):
    if preprocess:
        x = vgg_preprocess(x, vgg_normal_correct)
    h = jnp.transpose(x, (0, 2, 3, 1)).astype(jnp.float32)
    feats = {}
    cur = h
    for key, layer in _FORWARD_SPEC:
        if layer is None:
            cur = _ref_pool(cur, pool)
        else:
            w, b = params[layer]
            cur = _ref_conv3x3_relu(cur, w, b)
        feats[key] = cur
    return [jnp.transpose(feats[k], (0, 3, 1, 2)).astype(jnp.float32)
            for k in out_keys]


if __name__ == "__main__":
    key = jax.random.PRNGKey(0)
    kp, kx, kt, kw, kb, kf = jax.random.split(key, 6)

    # --- unit test: conv kernel (Hr > H exercises row masking) --------------
    H, W, Cin, Cout = 6, 12, 16, 32
    Hr, Wp = 8, _round_up(W + 1, 8)
    xt = jax.random.normal(kt, (1, H, W, Cin), jnp.float32)
    wt = jax.random.normal(kw, (9, Cin, Cout), jnp.float32) * 0.1
    bt = jax.random.normal(kb, (1, Cout), jnp.float32) * 0.1
    xpad = jnp.pad(xt, ((0, 0), (0, Hr - H), (0, Wp - W), (0, 0)))
    got_p = conv3x3_relu_padded(xpad, wt, bt, H=H, W=W)
    ref = _ref_conv3x3_relu(xt, wt, bt)
    rel = float(jnp.max(jnp.abs(got_p[:, :H, :W, :] - ref))
                / (jnp.max(jnp.abs(ref)) + 1e-6))
    assert rel < 1e-2, f"conv kernel mismatch: rel err {rel}"
    assert float(jnp.max(jnp.abs(got_p[:, H:, :, :]))) == 0.0
    assert float(jnp.max(jnp.abs(got_p[:, :, W:, :]))) == 0.0

    # --- unit test: pool kernel (max & avg) ----------------------------------
    for op in ("max", "avg"):
        pooled_p, Ho, Wo = pool2x2_padded(got_p, H=H, W=W, op=op)
        pref = _ref_pool(ref, op)
        prel = float(jnp.max(jnp.abs(pooled_p[:, :Ho, :Wo, :] - pref))
                     / (jnp.max(jnp.abs(pref)) + 1e-6))
        assert prel < 1e-2, f"pool({op}) mismatch: rel err {prel}"
        assert float(jnp.max(jnp.abs(pooled_p[:, Ho:, :, :]))) == 0.0
        assert float(jnp.max(jnp.abs(pooled_p[:, :, Wo:, :]))) == 0.0

    # --- full-model numeric check (f32 params) vs pure-JAX reference --------
    params_f32 = init_params(kp, ic=3, dtype=jnp.float32)
    xs = jax.random.uniform(kf, (1, 3, 32, 32), dtype=jnp.float32)
    keys_chk = ("r11", "r12", "p1", "r22", "r32", "r34", "r42", "r54", "p5")
    got_feats = vgg19_forward(params_f32, xs, out_keys=keys_chk)
    ref_feats = _ref_vgg_forward(params_f32, xs, keys_chk)
    for k, gf, rf in zip(keys_chk, got_feats, ref_feats):
        err = float(jnp.max(jnp.abs(gf - rf)) / (jnp.max(jnp.abs(rf)) + 1e-6))
        assert err < 2e-2, f"full model {k}: rel err {err}"

    # --- production-style bf16 forward ---------------------------------------
    params = init_params(kp, ic=3, dtype=jnp.bfloat16)
    model = VGG19FeatureColorPallas(params, pool="max",
                                    vgg_normal_correct=False)
    x = jax.random.uniform(kx, (2, 3, 32, 32), dtype=jnp.float32)
    out_keys = ["r11", "r12", "p1", "r22", "r34", "r44", "r54", "p5"]
    feats = model(x, out_keys, preprocess=True)
    for f in feats:
        jax.block_until_ready(f)

    assert feats[0].shape == (2, 64, 32, 32)
    assert feats[2].shape == (2, 64, 16, 16)
    assert feats[-2].shape == (2, 512, 2, 2)
    assert feats[-1].shape == (2, 512, 1, 1)
    assert all(bool(jnp.all(jnp.isfinite(f))) for f in feats)

    print("KERNEL_OK")
</pallas_src>

<mosaic_0001>
module attributes {stable_mosaic.version = 11 : i64} {
  func.func @kernel(%arg0: i32, %arg1: i32, %arg2: i32, %arg3: memref<1x8x16x16xf32, #tpu.memory_space<vmem>>, %arg4: memref<1x1x16x16xf32, #tpu.memory_space<vmem>>, %arg5: memref<1x1x16x16xf32, #tpu.memory_space<vmem>>, %arg6: memref<9x16x32xf32, #tpu.memory_space<vmem>>, %arg7: memref<1x32xf32, #tpu.memory_space<vmem>>, %arg8: memref<8x1x1xf32, #tpu.memory_space<vmem>>, %arg9: memref<1x8x16x32xf32, #tpu.memory_space<vmem>>, %arg10: memref<176x16xf32, #tpu.memory_space<vmem>>, %arg11: memref<128x32xf32, #tpu.memory_space<vmem>>) attributes {dimension_semantics = [#tpu.dimension_semantics<parallel>, #tpu.dimension_semantics<parallel>, #tpu.dimension_semantics<arbitrary>], iteration_bounds = array<i64: 1, 1, 1>, scalar_prefetch = 0 : i64, scratch_operands = 2 : i64, tpu.core_type = #tpu.core_type<tc>, window_params = [{transform_indices = @transform_0, window_bounds = array<i64: 1, 8, 16, 16>}, {transform_indices = @transform_1, window_bounds = array<i64: 1, 1, 16, 16>}, {transform_indices = @transform_2, window_bounds = array<i64: 1, 1, 16, 16>}, {transform_indices = @transform_3, window_bounds = array<i64: 9, 16, 32>}, {transform_indices = @transform_4, window_bounds = array<i64: 1, 32>}, {transform_indices = @transform_5, window_bounds = array<i64: 8, 1, 1>}, {transform_indices = @transform_6, window_bounds = array<i64: 1, 8, 16, 32>}]} {
    %cst = arith.constant 0.000000e+00 : f32
    %0 = vector.broadcast %cst : f32 to vector<8x16xf32>
    %c0 = arith.constant 0 : index
    %c0_0 = arith.constant 0 : index
    %1 = vector.load %arg10[%c0, %c0_0] : memref<176x16xf32, #tpu.memory_space<vmem>>, vector<8x16xf32>
    tpu.vector_store %arg10[%c0, %c0_0], %0 {strides = array<i32>} : memref<176x16xf32, #tpu.memory_space<vmem>>, vector<8x16xf32>,
    %c0_i32 = arith.constant 0 : i32
    %2 = arith.cmpi eq, %arg2, %c0_i32 : i32
    %3 = arith.extui %2 : i1 to i32
    %c0_i32_1 = arith.constant 0 : i32
    %4 = arith.cmpi ne, %3, %c0_i32_1 : i32
    scf.if %4 {
      %cst_102 = arith.constant 0.000000e+00 : f32
      %101 = vector.broadcast %cst_102 : f32 to vector<16x16xf32>
      %c8_103 = arith.constant 8 : index
      %c0_104 = arith.constant 0 : index
      %102 = vector.load %arg10[%c8_103, %c0_104] : memref<176x16xf32, #tpu.memory_space<vmem>>, vector<16x16xf32>
      tpu.vector_store %arg10[%c8_103, %c0_104], %101 {strides = array<i32>} : memref<176x16xf32, #tpu.memory_space<vmem>>, vector<16x16xf32>,
    } else {
    }
    %c0_i32_2 = arith.constant 0 : i32
    %5 = arith.cmpi sgt, %arg2, %c0_i32_2 : i32
    %6 = arith.extui %5 : i1 to i32
    %c0_i32_3 = arith.constant 0 : i32
    %7 = arith.cmpi ne, %6, %c0_i32_3 : i32
    scf.if %7 {
      %c0_102 = arith.constant 0 : index
      %c0_103 = arith.constant 0 : index
      %c0_104 = arith.constant 0 : index
      %c0_105 = arith.constant 0 : index
      %101 = vector.load %arg4[%c0_102, %c0_103, %c0_104, %c0_105] : memref<1x1x16x16xf32, #tpu.memory_space<vmem>>, vector<1x1x16x16xf32>
      %102 = vector.shape_cast %101 : vector<1x1x16x16xf32> to vector<16x16xf32>
      %c8_106 = arith.constant 8 : index
      %c0_107 = arith.constant 0 : index
      %103 = vector.load %arg10[%c8_106, %c0_107] : memref<176x16xf32, #tpu.memory_space<vmem>>, vector<16x16xf32>
      tpu.vector_store %arg10[%c8_106, %c0_107], %102 {strides = array<i32>} : memref<176x16xf32, #tpu.memory_space<vmem>>, vector<16x16xf32>,
    } else {
    }
    %c0_4 = arith.constant 0 : index
    %c0_5 = arith.constant 0 : index
    %c0_6 = arith.constant 0 : index
    %c0_7 = arith.constant 0 : index
    %8 = vector.load %arg3[%c0_4, %c0_5, %c0_6, %c0_7] : memref<1x8x16x16xf32, #tpu.memory_space<vmem>>, vector<1x8x16x16xf32>
    %9 = vector.shape_cast %8 : vector<1x8x16x16xf32> to vector<8x16x16xf32>
    %10 = vector.shape_cast %9 : vector<8x16x16xf32> to vector<128x16xf32>
    %c24 = arith.constant 24 : index
    %c0_8 = arith.constant 0 : index
    %11 = vector.load %arg10[%c24, %c0_8] : memref<176x16xf32, #tpu.memory_space<vmem>>, vector<128x16xf32>
    tpu.vector_store %arg10[%c24, %c0_8], %10 {strides = array<i32>} : memref<176x16xf32, #tpu.memory_space<vmem>>, vector<128x16xf32>,
    %c0_i32_9 = arith.constant 0 : i32
    %12 = arith.cmpi eq, %arg2, %c0_i32_9 : i32
    %13 = arith.extui %12 : i1 to i32
    %c0_i32_10 = arith.constant 0 : i32
    %14 = arith.cmpi ne, %13, %c0_i32_10 : i32
    scf.if %14 {
      %cst_102 = arith.constant 0.000000e+00 : f32
      %101 = vector.broadcast %cst_102 : f32 to vector<16x16xf32>
      %c152 = arith.constant 152 : index
      %c0_103 = arith.constant 0 : index
      %102 = vector.load %arg10[%c152, %c0_103] : memref<176x16xf32, #tpu.memory_space<vmem>>, vector<16x16xf32>
      tpu.vector_store %arg10[%c152, %c0_103], %101 {strides = array<i32>} : memref<176x16xf32, #tpu.memory_space<vmem>>, vector<16x16xf32>,
    } else {
    }
    %c0_i32_11 = arith.constant 0 : i32
    %15 = arith.cmpi slt, %arg2, %c0_i32_11 : i32
    %16 = arith.extui %15 : i1 to i32
    %c0_i32_12 = arith.constant 0 : i32
    %17 = arith.cmpi ne, %16, %c0_i32_12 : i32
    scf.if %17 {
      %c0_102 = arith.constant 0 : index
      %c0_103 = arith.constant 0 : index
      %c0_104 = arith.constant 0 : index
      %c0_105 = arith.constant 0 : index
      %101 = vector.load %arg5[%c0_102, %c0_103, %c0_104, %c0_105] : memref<1x1x16x16xf32, #tpu.memory_space<vmem>>, vector<1x1x16x16xf32>
      %102 = vector.shape_cast %101 : vector<1x1x16x16xf32> to vector<16x16xf32>
      %c152 = arith.constant 152 : index
      %c0_106 = arith.constant 0 : index
      %103 = vector.load %arg10[%c152, %c0_106] : memref<176x16xf32, #tpu.memory_space<vmem>>, vector<16x16xf32>
      tpu.vector_store %arg10[%c152, %c0_106], %102 {strides = array<i32>} : memref<176x16xf32, #tpu.memory_space<vmem>>, vector<16x16xf32>,
    } else {
    }
    %cst_13 = arith.constant 0.000000e+00 : f32
    %18 = vector.broadcast %cst_13 : f32 to vector<8x16xf32>
    %c168 = arith.constant 168 : index
    %c0_14 = arith.constant 0 : index
    %19 = vector.load %arg10[%c168, %c0_14] : memref<176x16xf32, #tpu.memory_space<vmem>>, vector<8x16xf32>
    tpu.vector_store %arg10[%c168, %c0_14], %18 {strides = array<i32>} : memref<176x16xf32, #tpu.memory_space<vmem>>, vector<8x16xf32>,
    %c7 = arith.constant 7 : index
    %c0_15 = arith.constant 0 : index
    %20 = vector.load %arg10[%c7, %c0_15] : memref<176x16xf32, #tpu.memory_space<vmem>>, vector<128x16xf32>
    %c0_16 = arith.constant 0 : index
    %c0_17 = arith.constant 0 : index
    %c0_18 = arith.constant 0 : index
    %21 = vector.load %arg6[%c0_16, %c0_17, %c0_18] : memref<9x16x32xf32, #tpu.memory_space<vmem>>, vector<1x16x32xf32>
    %22 = vector.shape_cast %21 : vector<1x16x32xf32> to vector<16x32xf32>
    %cst_19 = arith.constant dense<0.000000e+00> : vector<128x32xf32>
    %23 = tpu.matmul %20, %22, %cst_19 {dimension_numbers = #tpu.dot_dimension_numbers<[1], [0], [0], [1], [0, 0, 1, 1], [], []>} : vector<128x16xf32>, vector<16x32xf32>, vector<128x32xf32> -> vector<128x32xf32>
    %c0_20 = arith.constant 0 : index
    %c0_21 = arith.constant 0 : index
    %24 = vector.load %arg11[%c0_20, %c0_21] : memref<128x32xf32, #tpu.memory_space<vmem>>, vector<128x32xf32>
    tpu.vector_store %arg11[%c0_20, %c0_21], %23 {strides = array<i32>} : memref<128x32xf32, #tpu.memory_space<vmem>>, vector<128x32xf32>,
    %c8 = arith.constant 8 : index
    %c0_22 = arith.constant 0 : index
    %25 = vector.load %arg10[%c8, %c0_22] : memref<176x16xf32, #tpu.memory_space<vmem>>, vector<128x16xf32>
    %c1 = arith.constant 1 : index
    %c0_23 = arith.constant 0 : index
    %c0_24 = arith.constant 0 : index
    %26 = vector.load %arg6[%c1, %c0_23, %c0_24] : memref<9x16x32xf32, #tpu.memory_space<vmem>>, vector<1x16x32xf32>
    %27 = vector.shape_cast %26 : vector<1x16x32xf32> to vector<16x32xf32>
    %cst_25 = arith.constant dense<0.000000e+00> : vector<128x32xf32>
    %28 = tpu.matmul %25, %27, %cst_25 {dimension_numbers = #tpu.dot_dimension_numbers<[1], [0], [0], [1], [0, 0, 1, 1], [], []>} : vector<128x16xf32>, vector<16x32xf32>, vector<128x32xf32> -> vector<128x32xf32>
    %c0_26 = arith.constant 0 : index
    %c0_27 = arith.constant 0 : index
    %29 = vector.load %arg11[%c0_26, %c0_27] : memref<128x32xf32, #tpu.memory_space<vmem>>, vector<128x32xf32>
    %30 = arith.addf %29, %28 : vector<128x32xf32>
    %c0_28 = arith.constant 0 : index
    %c0_29 = arith.constant 0 : index
    %31 = vector.load %arg11[%c0_28, %c0_29] : memref<128x32xf32, #tpu.memory_space<vmem>>, vector<128x32xf32>
    tpu.vector_store %arg11[%c0_28, %c0_29], %30 {strides = array<i32>} : memref<128x32xf32, #tpu.memory_space<vmem>>, vector<128x32xf32>,
    %c9 = arith.constant 9 : index
    %c0_30 = arith.constant 0 : index
    %32 = vector.load %arg10[%c9, %c0_30] : memref<176x16xf32, #tpu.memory_space<vmem>>, vector<128x16xf32>
    %c2 = arith.constant 2 : index
    %c0_31 = arith.constant 0 : index
    %c0_32 = arith.constant 0 : index
    %33 = vector.load %arg6[%c2, %c0_31, %c0_32] : memref<9x16x32xf32, #tpu.memory_space<vmem>>, vector<1x16x32xf32>
    %34 = vector.shape_cast %33 : vector<1x16x32xf32> to vector<16x32xf32>
    %cst_33 = arith.constant dense<0.000000e+00> : vector<128x32xf32>
    %35 = tpu.matmul %32, %34, %cst_33 {dimension_numbers = #tpu.dot_dimension_numbers<[1], [0], [0], [1], [0, 0, 1, 1], [], []>} : vector<128x16xf32>, vector<16x32xf32>, vector<128x32xf32> -> vector<128x32xf32>
    %c0_34 = arith.constant 0 : index
    %c0_35 = arith.constant 0 : index
    %36 = vector.load %arg11[%c0_34, %c0_35] : memref<128x32xf32, #tpu.memory_space<vmem>>, vector<128x32xf32>
    %37 = arith.addf %36, %35 : vector<128x32xf32>
    %c0_36 = arith.constant 0 : index
    %c0_37 = arith.constant 0 : index
    %38 = vector.load %arg11[%c0_36, %c0_37] : memref<128x32xf32, #tpu.memory_space<vmem>>, vector<128x32xf32>
    tpu.vector_store %arg11[%c0_36, %c0_37], %37 {strides = array<i32>} : memref<128x32xf32, #tpu.memory_space<vmem>>, vector<128x32xf32>,
    %c23 = arith.constant 23 : index
    %c0_38 = arith.constant 0 : index
    %39 = vector.load %arg10[%c23, %c0_38] : memref<176x16xf32, #tpu.memory_space<vmem>>, vector<128x16xf32>
    %c3 = arith.constant 3 : index
    %c0_39 = arith.constant 0 : index
    %c0_40 = arith.constant 0 : index
    %40 = vector.load %arg6[%c3, %c0_39, %c0_40] : memref<9x16x32xf32, #tpu.memory_space<vmem>>, vector<1x16x32xf32>
    %41 = vector.shape_cast %40 : vector<1x16x32xf32> to vector<16x32xf32>
    %cst_41 = arith.constant dense<0.000000e+00> : vector<128x32xf32>
    %42 = tpu.matmul %39, %41, %cst_41 {dimension_numbers = #tpu.dot_dimension_numbers<[1], [0], [0], [1], [0, 0, 1, 1], [], []>} : vector<128x16xf32>, vector<16x32xf32>, vector<128x32xf32> -> vector<128x32xf32>
    %c0_42 = arith.constant 0 : index
    %c0_43 = arith.constant 0 : index
    %43 = vector.load %arg11[%c0_42, %c0_43] : memref<128x32xf32, #tpu.memory_space<vmem>>, vector<128x32xf32>
    %44 = arith.addf %43, %42 : vector<128x32xf32>
    %c0_44 = arith.constant 0 : index
    %c0_45 = arith.constant 0 : index
    %45 = vector.load %arg11[%c0_44, %c0_45] : memref<128x32xf32, #tpu.memory_space<vmem>>, vector<128x32xf32>
    tpu.vector_store %arg11[%c0_44, %c0_45], %44 {strides = array<i32>} : memref<128x32xf32, #tpu.memory_space<vmem>>, vector<128x32xf32>,
    %c24_46 = arith.constant 24 : index
    %c0_47 = arith.constant 0 : index
    %46 = vector.load %arg10[%c24_46, %c0_47] : memref<176x16xf32, #tpu.memory_space<vmem>>, vector<128x16xf32>
    %c4 = arith.constant 4 : index
    %c0_48 = arith.constant 0 : index
    %c0_49 = arith.constant 0 : index
    %47 = vector.load %arg6[%c4, %c0_48, %c0_49] : memref<9x16x32xf32, #tpu.memory_space<vmem>>, vector<1x16x32xf32>
    %48 = vector.shape_cast %47 : vector<1x16x32xf32> to vector<16x32xf32>
    %cst_50 = arith.constant dense<0.000000e+00> : vector<128x32xf32>
    %49 = tpu.matmul %46, %48, %cst_50 {dimension_numbers = #tpu.dot_dimension_numbers<[1], [0], [0], [1], [0, 0, 1, 1], [], []>} : vector<128x16xf32>, vector<16x32xf32>, vector<128x32xf32> -> vector<128x32xf32>
    %c0_51 = arith.constant 0 : index
    %c0_52 = arith.constant 0 : index
    %50 = vector.load %arg11[%c0_51, %c0_52] : memref<128x32xf32, #tpu.memory_space<vmem>>, vector<128x32xf32>
    %51 = arith.addf %50, %49 : vector<128x32xf32>
    %c0_53 = arith.constant 0 : index
    %c0_54 = arith.constant 0 : index
    %52 = vector.load %arg11[%c0_53, %c0_54] : memref<128x32xf32, #tpu.memory_space<vmem>>, vector<128x32xf32>
    tpu.vector_store %arg11[%c0_53, %c0_54], %51 {strides = array<i32>} : memref<128x32xf32, #tpu.memory_space<vmem>>, vector<128x32xf32>,
    %c25 = arith.constant 25 : index
    %c0_55 = arith.constant 0 : index
    %53 = vector.load %arg10[%c25, %c0_55] : memref<176x16xf32, #tpu.memory_space<vmem>>, vector<128x16xf32>
    %c5 = arith.constant 5 : index
    %c0_56 = arith.constant 0 : index
    %c0_57 = arith.constant 0 : index
    %54 = vector.load %arg6[%c5, %c0_56, %c0_57] : memref<9x16x32xf32, #tpu.memory_space<vmem>>, vector<1x16x32xf32>
    %55 = vector.shape_cast %54 : vector<1x16x32xf32> to vector<16x32xf32>
    %cst_58 = arith.constant dense<0.000000e+00> : vector<128x32xf32>
    %56 = tpu.matmul %53, %55, %cst_58 {dimension_numbers = #tpu.dot_dimension_numbers<[1], [0], [0], [1], [0, 0, 1, 1], [], []>} : vector<128x16xf32>, vector<16x32xf32>, vector<128x32xf32> -> vector<128x32xf32>
    %c0_59 = arith.constant 0 : index
    %c0_60 = arith.constant 0 : index
    %57 = vector.load %arg11[%c0_59, %c0_60] : memref<128x32xf32, #tpu.memory_space<vmem>>, vector<128x32xf32>
    %58 = arith.addf %57, %56 : vector<128x32xf32>
    %c0_61 = arith.constant 0 : index
    %c0_62 = arith.constant 0 : index
    %59 = vector.load %arg11[%c0_61, %c0_62] : memref<128x32xf32, #tpu.memory_space<vmem>>, vector<128x32xf32>
    tpu.vector_store %arg11[%c0_61, %c0_62], %58 {strides = array<i32>} : memref<128x32xf32, #tpu.memory_space<vmem>>, vector<128x32xf32>,
    %c39 = arith.constant 39 : index
    %c0_63 = arith.constant 0 : index
    %60 = vector.load %arg10[%c39, %c0_63] : memref<176x16xf32, #tpu.memory_space<vmem>>, vector<128x16xf32>
    %c6 = arith.constant 6 : index
    %c0_64 = arith.constant 0 : index
    %c0_65 = arith.constant 0 : index
    %61 = vector.load %arg6[%c6, %c0_64, %c0_65] : memref<9x16x32xf32, #tpu.memory_space<vmem>>, vector<1x16x32xf32>
    %62 = vector.shape_cast %61 : vector<1x16x32xf32> to vector<16x32xf32>
    %cst_66 = arith.constant dense<0.000000e+00> : vector<128x32xf32>
    %63 = tpu.matmul %60, %62, %cst_66 {dimension_numbers = #tpu.dot_dimension_numbers<[1], [0], [0], [1], [0, 0, 1, 1], [], []>} : vector<128x16xf32>, vector<16x32xf32>, vector<128x32xf32> -> vector<128x32xf32>
    %c0_67 = arith.constant 0 : index
    %c0_68 = arith.constant 0 : index
    %64 = vector.load %arg11[%c0_67, %c0_68] : memref<128x32xf32, #tpu.memory_space<vmem>>, vector<128x32xf32>
    %65 = arith.addf %64, %63 : vector<128x32xf32>
    %c0_69 = arith.constant 0 : index
    %c0_70 = arith.constant 0 : index
    %66 = vector.load %arg11[%c0_69, %c0_70] : memref<128x32xf32, #tpu.memory_space<vmem>>, vector<128x32xf32>
    tpu.vector_store %arg11[%c0_69, %c0_70], %65 {strides = array<i32>} : memref<128x32xf32, #tpu.memory_space<vmem>>, vector<128x32xf32>,
    %c40 = arith.constant 40 : index
    %c0_71 = arith.constant 0 : index
    %67 = vector.load %arg10[%c40, %c0_71] : memref<176x16xf32, #tpu.memory_space<vmem>>, vector<128x16xf32>
    %c7_72 = arith.constant 7 : index
    %c0_73 = arith.constant 0 : index
    %c0_74 = arith.constant 0 : index
    %68 = vector.load %arg6[%c7_72, %c0_73, %c0_74] : memref<9x16x32xf32, #tpu.memory_space<vmem>>, vector<1x16x32xf32>
    %69 = vector.shape_cast %68 : vector<1x16x32xf32> to vector<16x32xf32>
    %cst_75 = arith.constant dense<0.000000e+00> : vector<128x32xf32>
    %70 = tpu.matmul %67, %69, %cst_75 {dimension_numbers = #tpu.dot_dimension_numbers<[1], [0], [0], [1], [0, 0, 1, 1], [], []>} : vector<128x16xf32>, vector<16x32xf32>, vector<128x32xf32> -> vector<128x32xf32>
    %c0_76 = arith.constant 0 : index
    %c0_77 = arith.constant 0 : index
    %71 = vector.load %arg11[%c0_76, %c0_77] : memref<128x32xf32, #tpu.memory_space<vmem>>, vector<128x32xf32>
    %72 = arith.addf %71, %70 : vector<128x32xf32>
    %c0_78 = arith.constant 0 : index
    %c0_79 = arith.constant 0 : index
    %73 = vector.load %arg11[%c0_78, %c0_79] : memref<128x32xf32, #tpu.memory_space<vmem>>, vector<128x32xf32>
    tpu.vector_store %arg11[%c0_78, %c0_79], %72 {strides = array<i32>} : memref<128x32xf32, #tpu.memory_space<vmem>>, vector<128x32xf32>,
    %c41 = arith.constant 41 : index
    %c0_80 = arith.constant 0 : index
    %74 = vector.load %arg10[%c41, %c0_80] : memref<176x16xf32, #tpu.memory_space<vmem>>, vector<128x16xf32>
    %c8_81 = arith.constant 8 : index
    %c0_82 = arith.constant 0 : index
    %c0_83 = arith.constant 0 : index
    %75 = vector.load %arg6[%c8_81, %c0_82, %c0_83] : memref<9x16x32xf32, #tpu.memory_space<vmem>>, vector<1x16x32xf32>
    %76 = vector.shape_cast %75 : vector<1x16x32xf32> to vector<16x32xf32>
    %cst_84 = arith.constant dense<0.000000e+00> : vector<128x32xf32>
    %77 = tpu.matmul %74, %76, %cst_84 {dimension_numbers = #tpu.dot_dimension_numbers<[1], [0], [0], [1], [0, 0, 1, 1], [], []>} : vector<128x16xf32>, vector<16x32xf32>, vector<128x32xf32> -> vector<128x32xf32>
    %c0_85 = arith.constant 0 : index
    %c0_86 = arith.constant 0 : index
    %78 = vector.load %arg11[%c0_85, %c0_86] : memref<128x32xf32, #tpu.memory_space<vmem>>, vector<128x32xf32>
    %79 = arith.addf %78, %77 : vector<128x32xf32>
    %c0_87 = arith.constant 0 : index
    %c0_88 = arith.constant 0 : index
    %80 = vector.load %arg11[%c0_87, %c0_88] : memref<128x32xf32, #tpu.memory_space<vmem>>, vector<128x32xf32>
    tpu.vector_store %arg11[%c0_87, %c0_88], %79 {strides = array<i32>} : memref<128x32xf32, #tpu.memory_space<vmem>>, vector<128x32xf32>,
    %c0_89 = arith.constant 0 : index
    %c0_90 = arith.constant 0 : index
    %81 = vector.load %arg11[%c0_89, %c0_90] : memref<128x32xf32, #tpu.memory_space<vmem>>, vector<128x32xf32>
    %c0_91 = arith.constant 0 : index
    %c0_92 = arith.constant 0 : index
    %82 = vector.load %arg7[%c0_91, %c0_92] : memref<1x32xf32, #tpu.memory_space<vmem>>, vector<1x32xf32>
    %83 = vector.broadcast %82 : vector<1x32xf32> to vector<128x32xf32>
    %84 = arith.addf %81, %83 : vector<128x32xf32>
    %cst_93 = arith.constant 0.000000e+00 : f32
    %85 = vector.broadcast %cst_93 : f32 to vector<128x32xf32>
    %86 = arith.maximumf %84, %85 : vector<128x32xf32>
    %87 = vector.shape_cast %86 : vector<128x32xf32> to vector<8x16x32xf32>
    %88 = tpu.iota {dimensions = array<i32: 0>} : vector<16x1xi32>
    %c12_i32 = arith.constant 12 : i32
    %89 = vector.broadcast %c12_i32 : i32 to vector<16x1xi32>
    %90 = arith.cmpi slt, %88, %89 : vector<16x1xi32>
    %cst_94 = arith.constant 0.000000e+00 : f32
    %91 = vector.shape_cast %90 : vector<16x1xi1> to vector<1x16x1xi1>
    %92 = vector.broadcast %91 : vector<1x16x1xi1> to vector<8x16x32xi1>
    %93 = vector.broadcast %cst_94 : f32 to vector<8x16x32xf32>
    %94 = arith.select %92, %87, %93 : vector<8x16x32xi1>, vector<8x16x32xf32>
    %c0_95 = arith.constant 0 : index
    %c0_96 = arith.constant 0 : index
    %c0_97 = arith.constant 0 : index
    %95 = vector.load %arg8[%c0_95, %c0_96, %c0_97] : memref<8x1x1xf32, #tpu.memory_space<vmem>>, vector<8x1x1xf32>
    %96 = vector.broadcast %95 : vector<8x1x1xf32> to vector<8x16x32xf32>
    %97 = arith.mulf %94, %96 : vector<8x16x32xf32>
    %c0_98 = arith.constant 0 : index
    %c0_99 = arith.constant 0 : index
    %c0_100 = arith.constant 0 : index
    %c0_101 = arith.constant 0 : index
    %98 = vector.load %arg9[%c0_98, %c0_99, %c0_100, %c0_101] : memref<1x8x16x32xf32, #tpu.memory_space<vmem>>, vector<1x8x16x32xf32>
    %99 = vector.shape_cast %98 : vector<1x8x16x32xf32> to vector<8x16x32xf32>
    %100 = vector.shape_cast %97 : vector<8x16x32xf32> to vector<1x8x16x32xf32>
    tpu.vector_store %arg9[%c0_98, %c0_99, %c0_100, %c0_101], %100 {strides = array<i32>} : memref<1x8x16x32xf32, #tpu.memory_space<vmem>>, vector<1x8x16x32xf32>,
    return
  }
  func.func @transform_0(%arg0: i32, %arg1: i32, %arg2: i32) -> (i32, i32, i32, i32) {
    %c0_i32 = arith.constant 0 : i32
    %c0_i32_0 = arith.constant 0 : i32
    %c0_i32_1 = arith.constant 0 : i32
    return %arg0, %arg2, %c0_i32, %c0_i32_0 : i32, i32, i32, i32
  }
  func.func @transform_1(%arg0: i32, %arg1: i32, %arg2: i32) -> (i32, i32, i32, i32) {
    %c8_i32 = arith.constant 8 : i32
    %0 = arith.muli %arg2, %c8_i32 : i32
    %c1_i32 = arith.constant 1 : i32
    %1 = arith.subi %0, %c1_i32 : i32
    %c0_i32 = arith.constant 0 : i32
    %2 = arith.maxsi %1, %c0_i32 : i32
    %c0_i32_0 = arith.constant 0 : i32
    %c0_i32_1 = arith.constant 0 : i32
    %c0_i32_2 = arith.constant 0 : i32
    return %arg0, %2, %c0_i32_0, %c0_i32_1 : i32, i32, i32, i32
  }
  func.func @transform_2(%arg0: i32, %arg1: i32, %arg2: i32) -> (i32, i32, i32, i32) {
    %c1_i32 = arith.constant 1 : i32
    %0 = arith.addi %arg2, %c1_i32 : i32
    %c8_i32 = arith.constant 8 : i32
    %1 = arith.muli %0, %c8_i32 : i32
    %c7_i32 = arith.constant 7 : i32
    %2 = arith.minsi %1, %c7_i32 : i32
    %c0_i32 = arith.constant 0 : i32
    %c0_i32_0 = arith.constant 0 : i32
    %c0_i32_1 = arith.constant 0 : i32
    return %arg0, %2, %c0_i32, %c0_i32_0 : i32, i32, i32, i32
  }
  func.func @transform_3(%arg0: i32, %arg1: i32, %arg2: i32) -> (i32, i32, i32) {
    %c0_i32 = arith.constant 0 : i32
    %c0_i32_0 = arith.constant 0 : i32
    %c0_i32_1 = arith.constant 0 : i32
    return %c0_i32, %c0_i32_0, %arg1 : i32, i32, i32
  }
  func.func @transform_4(%arg0: i32, %arg1: i32, %arg2: i32) -> (i32, i32) {
    %c0_i32 = arith.constant 0 : i32
    %c0_i32_0 = arith.constant 0 : i32
    return %c0_i32, %arg1 : i32, i32
  }
  func.func @transform_5(%arg0: i32, %arg1: i32, %arg2: i32) -> (i32, i32, i32) {
    %c0_i32 = arith.constant 0 : i32
    %c0_i32_0 = arith.constant 0 : i32
    %c0_i32_1 = arith.constant 0 : i32
    return %arg2, %c0_i32, %c0_i32_0 : i32, i32, i32
  }
  func.func @transform_6(%arg0: i32, %arg1: i32, %arg2: i32) -> (i32, i32, i32, i32) {
    %c0_i32 = arith.constant 0 : i32
    %c0_i32_0 = arith.constant 0 : i32
    return %arg0, %arg2, %c0_i32, %arg1 : i32, i32, i32, i32
  }
}

</mosaic_0001>

<bundles_post_ra>
// kernel: tpu_custom_call.1
= control target key start
LH: loop header
LB: loop body
LE: loop exit
PB: predicated region body
PF: predicated region fallthrough
CT: control target
= control target key end

     0   :  { %11 = vsyncpa [#allocation5], 0  ;;  %s4168_s0 = inlined_call_operand.hbm [shape: f32[1,8,16,16], index: 0, kind: input, shape index: {}]   ;;  %s4169_s1 = inlined_call_operand.hbm [shape: f32[1,8,16,16], index: 1, kind: input, shape index: {}]   ;;  %s4170_s2 = inlined_call_operand.hbm [shape: f32[1,8,16,16], index: 2, kind: input, shape index: {}]   ;;  %s4171_s3 = inlined_call_operand.hbm [shape: f32[9,16,32], index: 3, kind: input, shape index: {}]   ;;  %s4172_s4 = inlined_call_operand.vmem [shape: f32[1,32], index: 4, kind: input, shape index: {}]   ;;  %s4173_s5 = inlined_call_operand.vmem [shape: f32[8,1,1], index: 5, kind: input, shape index: {}]   ;;  %s4174_s6 = inlined_call_operand.hbm [shape: f32[1,8,16,32], index: 6, kind: output, shape index: {}]  }
   0x1   :  { %12 = vsyncpa [#allocation8], 0 }
   0x2   :  { %13 = vsyncpa [#allocation11], 0 }
   0x3   :  { %14 = vsyncpa [#allocation6], 0  ;;  %s3423_s21 = smov [#allocation7]   ;;  %s3424_s23 = smov [#allocation4]  }
   0x4   :  { %s39_s22 = sshll.u32 %s3423_s21, 4  ;;  %s20_s24 = sshll.u32 %s3424_s23, 4  ;;  %s40_s22 = int_to_ptr.vmem [resolvable:$true] %s39_s22  ;;  %s3467_s24 = int_to_ptr.vmem [resolvable:$true] %s20_s24 }
   0x5   :  { %s3302_s27 = scalar_lea.hbm %s4169_s1, 256  ;;  %s3304_s8 = scalar_lea.hbm %s4169_s1, 2048 }
   0x6   :  { %p3303_p0 = scmp.ne.s32.totalorder %s4169_s1, %s3302_s27  ;;  %p3305_p1 = scmp.lt.u32.totalorder %s3304_s8, %s3302_s27 }
   0x7   :  { %p3306_p2 = scmp.lt.u32.totalorder %s3302_s27, %s4169_s1 }
   0x9   :  { %p3307_p3 = por %p3306_p2, %p3305_p1 }
   0xb   :  { %p3308_p4 = pnand %p3307_p3, %p3303_p0 }
   0xd   :  { %3311 = shalt.err (!%p3308_p4)
}
   0xe   :  { %s3312_s11 = scalar_lea.vmem %s40_s22, 256  ;;  %p3317_p6 = scmp.lt.s32.totalorder %s40_s22, %s40_s22 }
   0xf   :  { %p3313_p5 = scmp.ne.s32.totalorder %s40_s22, %s3312_s11  ;;  %p3318_p7 = scmp.lt.s32.totalorder %s3312_s11, %s3312_s11 }
  0x11   :  { %p3319_p8 = por %p3318_p7, %p3317_p6 }
  0x13   :  { %p3320_p9 = pnand %p3319_p8, %p3313_p5 }
  0x15   :  { %3323 = shalt.err (!%p3320_p9)
}
  0x16   :  { %s3425_s12 = smov 128   ;;  %s3426_s13 = smov 8  }
  0x17   :  { %45 = dma.hbm_to_vmem [thread:$0]  %s4169_s1, 256, %s40_s22, [#allocation8], %s3425_s12, %s3425_s12, %s3426_s13  }
  0x18   :  { %s3324_s18 = scalar_lea.hbm %s4168_s0, 2048 }
  0x19   :  { %p3325_p10 = scmp.ne.s32.totalorder %s4168_s0, %s3324_s18  ;;  %p3328_p11 = scmp.lt.u32.totalorder %s3324_s18, %s4168_s0 }
  0x1b   :  { %p3330_p12 = pnand %p3328_p11, %p3325_p10 }
  0x1d   :  { %3333 = shalt.err (!%p3330_p12)
}
  0x1e   :  { %s3334_s25 = scalar_lea.vmem %s3467_s24, 2048  ;;  %p3339_p0 = scmp.lt.s32.totalorder %s3467_s24, %s3467_s24 }
  0x1f   :  { %p3335_p13 = scmp.ne.s32.totalorder %s3467_s24, %s3334_s25  ;;  %p3340_p1 = scmp.lt.s32.totalorder %s3334_s25, %s3334_s25 }
  0x21   :  { %p3341_p2 = por %p3340_p1, %p3339_p0 }
  0x23   :  { %p3342_p3 = pnand %p3341_p2, %p3335_p13 }
  0x25   :  { %3345 = shalt.err (!%p3342_p3)
}
  0x26   :  { %26 = dma.hbm_to_vmem [thread:$0]  %s4168_s0, 2048, %s3467_s24, [#allocation5], %s3425_s12, %s3425_s12, %s3426_s13  }
  0x27   :  { %s57_s28 = scalar_lea.hbm %s4170_s2, 1792  ;;  %s3427_s29 = smov [#allocation9]  }
  0x28   :  { %s58_s30 = sshll.u32 %s3427_s29, 4  ;;  %s3428_s7 = smov [#allocation10]   ;;  %s59_s30 = int_to_ptr.vmem [resolvable:$true] %s58_s30 }
  0x29   :  { %s70_s8 = sshll.u32 %s3428_s7, 4  ;;  %s3370_s11 = scalar_lea.hbm %s4170_s2, 2048  ;;  %s71_s8 = int_to_ptr.vmem [resolvable:$true] %s70_s8 }
  0x2a   :  { %p3347_p4 = scmp.ne.s32.totalorder %s57_s28, %s3370_s11  ;;  %p3349_p5 = scmp.lt.u32.totalorder %s57_s28, %s4170_s2 }
  0x2b   :  { %p3350_p6 = scmp.lt.u32.totalorder %s3370_s11, %s3370_s11  ;;  %p3352_p8 = scmp.lt.u32.totalorder %s3370_s11, %s57_s28 }
  0x2d   :  { %p3351_p7 = por %p3350_p6, %p3349_p5 }
  0x2f   :  { %p3353_p9 = por %p3352_p8, %p3351_p7 }
  0x31   :  { %p3354_p10 = pnand %p3353_p9, %p3347_p4 }
  0x33   :  { %3357 = shalt.err (!%p3354_p10)
}
  0x34   :  { %s3358_s0 = scalar_lea.vmem %s59_s30, 256  ;;  %p3363_p12 = scmp.lt.s32.totalorder %s59_s30, %s59_s30 }
  0x35   :  { %p3359_p11 = scmp.ne.s32.totalorder %s59_s30, %s3358_s0  ;;  %p3364_p13 = scmp.lt.s32.totalorder %s3358_s0, %s3358_s0 }
  0x37   :  { %p3365_p0 = por %p3364_p13, %p3363_p12 }
  0x39   :  { %p3366_p1 = pnand %p3365_p0, %p3359_p11 }
  0x3b   :  { %3369 = shalt.err (!%p3366_p1)
}
  0x3c   :  { %64 = dma.hbm_to_vmem [thread:$0]  %s57_s28, 256, %s59_s30, [#allocation8], %s3425_s12, %s3425_s12, %s3426_s13  }
  0x3d   :  { %s3371_s16 = scalar_lea.hbm %s4171_s3, 2304 }
  0x3e   :  { %p3372_p2 = scmp.ne.s32.totalorder %s4171_s3, %s3371_s16  ;;  %p3375_p3 = scmp.lt.u32.totalorder %s3371_s16, %s4171_s3 }
  0x40   :  { %p3377_p4 = pnand %p3375_p3, %p3372_p2 }
  0x42   :  { %3380 = shalt.err (!%p3377_p4)
}
  0x43   :  { %s3381_s21 = scalar_lea.vmem %s71_s8, 2304  ;;  %p3386_p6 = scmp.lt.s32.totalorder %s71_s8, %s71_s8 }
  0x44   :  { %p3382_p5 = scmp.ne.s32.totalorder %s71_s8, %s3381_s21  ;;  %p3387_p7 = scmp.lt.s32.totalorder %s3381_s21, %s3381_s21 }
  0x46   :  { %p3388_p8 = por %p3387_p7, %p3386_p6 }
  0x48   :  { %p3389_p9 = pnand %p3388_p8, %p3382_p5 }
  0x4a   :  { %3392 = shalt.err (!%p3389_p9)
}
  0x4b   :  { %76 = dma.hbm_to_vmem [thread:$0]  %s4171_s3, 2304, %s71_s8, [#allocation11], %s3425_s12, %s3425_s12, %s3426_s13  }
  0x4c   :  { %3415 = dma.done.wait [#allocation5], 2048  }
  0x4d   :  { %3416 = vsyncadd [#allocation5], 4294965248 }
  0x4e   :  { %3417 = dma.done.wait [#allocation8], 512  }
  0x4f   :  { %3418 = vsyncadd [#allocation8], 4294966784 }
  0x50   :  { %3419 = dma.done.wait [#allocation11], 2304  }
  0x51   :  { %3420 = vsyncadd [#allocation11], 4294964992  ;;  %vm101_vm0 = vcmask 130048   ;;  %v3429_v0 = vmov 0.0   ;;  %v179_v1 = vld [vmem:[#allocation10] sm:$0xff]  ;;  %v180_v2 = vld [vmem:[#allocation10 + $0x8] sm:$0xff] }
  0x52   :  { %102 = vst.msk [vmem:[#allocation2] sm:$0xff] %vm101_vm0, %v3429_v0  ;;  %107 = vst.msk [vmem:[#allocation2 + $0x8] sm:$0xff] %vm101_vm0, %v3429_v0  ;;  %v122_v3 = vld [vmem:[#allocation4 + $0x28] sm:$0xff]  ;;  %v3253_v4 = vpack.c.bf16 %v180_v2, %v179_v1  ;;  %v123_v5 = vld [vmem:[#allocation4 + $0x30] sm:$0xff]  ;;  %vm374_vm1 = vcmask 261120  }
  0x53   :  { %108 = vst.msk [vmem:[#allocation2 + $0x10] sm:$0xff] %vm101_vm0, %v3429_v0  ;;  %152 = vst.msk [vmem:[#allocation2 + $0x98] sm:$0xff] %vm101_vm0, %v3429_v0  ;;  %v408_v6 = vld [vmem:[#allocation10 + $0x10] sm:$0xff]  ;;  %v409_v7 = vld [vmem:[#allocation10 + $0x18] sm:$0xff] }
  0x54   :  { %153 = vst.msk [vmem:[#allocation2 + $0xa0] sm:$0xff] %vm101_vm0, %v3429_v0  ;;  %162 = vst.msk [vmem:[#allocation2 + $0xa8] sm:$0xff] %vm101_vm0, %v3429_v0  ;;  %v3257_v8 = vpack.c.bf16 %v409_v7, %v408_v6  ;;  %v124_v9 = vld [vmem:[#allocation4 + $0x38] sm:$0xff]  ;;  %v125_v10 = vld [vmem:[#allocation4 + $0x40] sm:$0xff]  ;;  %3289 = vmatprep.subr.bf16.mxu1 %v3253_v4  ;;  %3254 = vmatprep.subr.bf16.mxu0 %v3253_v4 }
  0x55   :  { %138 = vst.msk [vmem:[#allocation2 + $0x40] sm:$0xff] %vm101_vm0, %v122_v3  ;;  %139 = vst.msk [vmem:[#allocation2 + $0x48] sm:$0xff] %vm101_vm0, %v123_v5  ;;  %v126_v11 = vld [vmem:[#allocation4 + $0x48] sm:$0xff]  ;;  %v127_v13 = vld [vmem:[#allocation4 + $0x50] sm:$0xff]  ;;  %3290 = vmatpush3.bf16.msra.mxu1 %v3253_v4  ;;  %3256 = vmatpush3.bf16.msra.mxu0 %v3253_v4 }
  0x56   :  { %140 = vst.msk [vmem:[#allocation2 + $0x50] sm:$0xff] %vm101_vm0, %v124_v9  ;;  %141 = vst.msk [vmem:[#allocation2 + $0x58] sm:$0xff] %vm101_vm0, %v125_v10  ;;  %v128_v15 = vld [vmem:[#allocation4 + $0x58] sm:$0xff]  ;;  %v668_v16 = vld [vmem:[#allocation10 + $0x20] sm:$0xff]  ;;  %3258 = vmatprep.subr.bf16.mxu1 %v3257_v8 }
  0x57   :  { %142 = vst.msk [vmem:[#allocation2 + $0x60] sm:$0xff] %vm101_vm0, %v126_v11  ;;  %143 = vst.msk [vmem:[#allocation2 + $0x68] sm:$0xff] %vm101_vm0, %v127_v13  ;;  %v669_v17 = vld [vmem:[#allocation10 + $0x28] sm:$0xff]  ;;  %v117_v19 = vld [vmem:[#allocation4] sm:$0xff] }
  0x58   :  { %144 = vst.msk [vmem:[#allocation2 + $0x70] sm:$0xff] %vm101_vm0, %v128_v15  ;;  %v3261_v18 = vpack.c.bf16 %v669_v17, %v668_v16  ;;  %v129_v20 = vld [vmem:[#allocation4 + $0x60] sm:$0xff]  ;;  %v118_v21 = vld [vmem:[#allocation4 + $0x8] sm:$0xff]  ;;  %133 = vst.msk [vmem:[#allocation2 + $0x18] sm:$0xff] %vm101_vm0, %v117_v19 }
  0x59   :  { %v163_v12 = vld [vmem:[#allocation2 + $0x7] sm:$0xff]  ;;  %145 = vst.msk [vmem:[#allocation2 + $0x78] sm:$0xff] %vm101_vm0, %v129_v20  ;;  %134 = vst.msk [vmem:[#allocation2 + $0x20] sm:$0xff] %vm101_vm0, %v118_v21  ;;  %v130_v22 = vld [vmem:[#allocation4 + $0x68] sm:$0xff] }
  0x5a   :  { %v164_v14 = vld [vmem:[#allocation2 + $0xf] sm:$0xff]  ;;  %3005 = vmatprep.mubr.msk.f32.mxu0 %vm101_vm0, %v163_v12  ;;  %v119_v23 = vld [vmem:[#allocation4 + $0x10] sm:$0xff]  ;;  %3262 = vmatprep.subr.bf16.mxu0 %v3261_v18  ;;  %146 = vst.msk [vmem:[#allocation2 + $0x80] sm:$0xff] %vm101_vm0, %v130_v22  ;;  %v1189_v31 = vld [vmem:[#allocation10 + $0x48] sm:$0xff] }
  0x5b   :  { %3006 = vmatmul.mubr.msk.f32.vlgmr.msra.gmra.mrb[0].mxu0 %vm101_vm0, %v164_v14  ;;  %135 = vst.msk [vmem:[#allocation2 + $0x28] sm:$0xff] %vm101_vm0, %v119_v23  ;;  %v928_v24 = vld [vmem:[#allocation10 + $0x30] sm:$0xff]  ;;  %v929_v25 = vld [vmem:[#allocation10 + $0x38] sm:$0xff]  ;;  %v121_v27 = vld [vmem:[#allocation4 + $0x20] sm:$0xff] }
  0x5c   :  { %v120_v26 = vld [vmem:[#allocation4 + $0x18] sm:$0xff]  ;;  %3264 = vmatpush3.bf16.msra.mxu0 %v3261_v18  ;;  %v3265_v29 = vpack.c.bf16 %v929_v25, %v928_v24  ;;  %137 = vst.msk [vmem:[#allocation2 + $0x38] sm:$0xff] %vm101_vm0, %v121_v27  ;;  %v1188_v30 = vld [vmem:[#allocation10 + $0x40] sm:$0xff]  ;;  %v1448_v49 = vld [vmem:[#allocation10 + $0x50] sm:$0xff] }
  0x5d   :  { %136 = vst.msk [vmem:[#allocation2 + $0x30] sm:$0xff] %vm101_vm0, %v120_v26  ;;  %v3555_v28 = vld [vmem:[#allocation2 + $0x47] sm:$0xff]  ;;  %v3560_v32 = vld [vmem:[#allocation2 + $0x4f] sm:$0xff]  ;;  %v3562_v33 = vld [vmem:[#allocation2 + $0x57] sm:$0xff]  ;;  %v3269_v34 = vpack.c.bf16 %v1189_v31, %v1188_v30 }
  0x5e   :  { %3017 = vmatprep.mubr.msk.f32.mxu1 %vm101_vm0, %v3555_v28  ;;  %v3568_v35 = vld [vmem:[#allocation2 + $0x5f] sm:$0xff]  ;;  %v3570_v36 = vld [vmem:[#allocation2 + $0x67] sm:$0xff]  ;;  %v392_v48 = vld [vmem:[#allocation2 + $0x10] sm:$0xff] }
  0x5f   :  { %3018 = vmatmul.mubr.msk.f32.vlgmr.msra.gmra.mrb[0].mxu1 %vm101_vm0, %v3560_v32  ;;  %v3572_v37 = vld [vmem:[#allocation2 + $0x17] sm:$0xff]  ;;  %3270 = vmatprep.subr.bf16.mxu0 %v3269_v34  ;;  %v3586_v40 = vld [vmem:[#allocation2 + $0x6f] sm:$0xff]  ;;  %v131_v52 = vld [vmem:[#allocation4 + $0x70] sm:$0xff] }
  0x60   :  { %3260 = vmatpush3.bf16.msra.mxu1 %v3257_v8  ;;  %3020 = vmatprep.mubr.msk.f32.mxu1 %vm101_vm0, %v3562_v33  ;;  %v3574_v38 = vld [vmem:[#allocation2 + $0x1f] sm:$0xff]  ;;  %v3592_v42 = vld [vmem:[#allocation2 + $0x77] sm:$0xff]  ;;  %v391_v46 = vld [vmem:[#allocation2 + $0x8] sm:$0xff]  ;;  %147 = vst.msk [vmem:[#allocation2 + $0x88] sm:$0xff] %vm101_vm0, %v131_v52 }
  0x61   :  { %3266 = vmatprep.subr.bf16.mxu1 %v3265_v29  ;;  %3008 = vmatprep.mubr.msk.f32.mxu0 %vm101_vm0, %v3572_v37  ;;  %v3602_v44 = vld [vmem:[#allocation2 + $0x7f] sm:$0xff]  ;;  %v651_v47 = vld [vmem:[#allocation2 + $0x9] sm:$0xff]  ;;  %v652_v51 = vld [vmem:[#allocation2 + $0x11] sm:$0xff] }
  0x62   :  { %v3578_v39 = vld [vmem:[#allocation2 + $0x27] sm:$0xff]  ;;  %3009 = vmatmul.mubr.msk.f32.gmra.mrb[2].mxu0 %vm101_vm0, %v3574_v38  ;;  %v1708_v53 = vld [vmem:[#allocation10 + $0x60] sm:$0xff]  ;;  %v3614_v54 = vld [vmem:[#allocation2 + $0x18] sm:$0xff] }
  0x63   :  { %3021 = vmatmul.mubr.msk.f32.gmra.mrb[2].mxu1 %vm101_vm0, %v3568_v35  ;;  %3011 = vmatprep.mubr.msk.f32.mxu0 %vm101_vm0, %v3578_v39  ;;  %v3606_v45 = vld [vmem:[#allocation2 + $0x3f] sm:$0xff]  ;;  %v1449_v50 = vld [vmem:[#allocation10 + $0x58] sm:$0xff]  ;;  %v3678_v8 = vld [vmem:[#allocation2 + $0x50] sm:$0xff] }
  0x64   :  { %3023 = vmatprep.mubr.msk.f32.mxu1 %vm101_vm0, %v3570_v36  ;;  %v3590_v41 = vld [vmem:[#allocation2 + $0x2f] sm:$0xff]  ;;  %v3594_v43 = vld [vmem:[#allocation2 + $0x37] sm:$0xff]  ;;  %v3619_v58 = vpack.c.bf16 %v1449_v50, %v1448_v49  ;;  %v3628_v60 = vld [vmem:[#allocation2 + $0x20] sm:$0xff] }
  0x65   :  { %v1709_v55 = vld [vmem:[#allocation10 + $0x68] sm:$0xff]  ;;  %v132_v56 = vld [vmem:[#allocation4 + $0x78] sm:$0xff]  ;;  %v3646_v0 = vld [vmem:[#allocation2 + $0x30] sm:$0xff] }
  0x66   :  { %3012 = vmatmul.mubr.msk.f32.gmra.mrb[4].mxu0 %vm101_vm0, %v3590_v41  ;;  %v3617_v57 = vld [vmem:[#allocation2 + $0x19] sm:$0xff]  ;;  %v3621_v59 = vpack.c.bf16 %v1709_v55, %v1708_v53  ;;  %148 = vst.msk [vmem:[#allocation2 + $0x90] sm:$0xff] %vm101_vm0, %v132_v56  ;;  %v3630_v61 = vld [vmem:[#allocation2 + $0x21] sm:$0xff]  ;;  %v3636_v63 = vld [vmem:[#allocation2 + $0x29] sm:$0xff] }
  0x67   :  { %3024 = vmatmul.mubr.msk.f32.gmra.mrb[4].mxu1 %vm101_vm0, %v3586_v40  ;;  %3014 = vmatprep.mubr.msk.f32.mxu0 %vm101_vm0, %v3594_v43  ;;  %v3632_v62 = vld [vmem:[#allocation2 + $0x28] sm:$0xff]  ;;  %v3650_v1 = vld [vmem:[#allocation2 + $0x31] sm:$0xff]  ;;  %v3654_v3 = vld [vmem:[#allocation2 + $0x39] sm:$0xff] }
  0x68   :  { %3026 = vmatprep.mubr.msk.f32.mxu1 %vm101_vm0, %v3592_v42  ;;  %v3652_v2 = vld [vmem:[#allocation2 + $0x38] sm:$0xff]  ;;  %v3662_v4 = vld [vmem:[#allocation2 + $0x40] sm:$0xff]  ;;  %v3668_v6 = vld [vmem:[#allocation2 + $0x48] sm:$0xff] }
  0x69   :  { %v3666_v5 = vld [vmem:[#allocation2 + $0x41] sm:$0xff]  ;;  %v3670_v7 = vld [vmem:[#allocation2 + $0x49] sm:$0xff]  ;;  %v3682_v9 = vld [vmem:[#allocation2 + $0x51] sm:$0xff] }
  0x6a   :  { %3015 = vmatmul.mubr.msk.f32.gmra.mrb[6].mxu0 %vm101_vm0, %v3606_v45  ;;  %v3684_v10 = vld [vmem:[#allocation2 + $0x58] sm:$0xff]  ;;  %v3694_v12 = vld [vmem:[#allocation2 + $0x60] sm:$0xff]  ;;  %v3700_v14 = vld [vmem:[#allocation2 + $0x68] sm:$0xff] }
  0x6b   :  { %3027 = vmatmul.mubr.msk.f32.gmra.mrb[6].mxu1 %vm101_vm0, %v3602_v44  ;;  %3061 = vmatprep.mubr.msk.f32.mxu0 %vm101_vm0, %v651_v47  ;;  %v3686_v11 = vld [vmem:[#allocation2 + $0x59] sm:$0xff]  ;;  %v3698_v13 = vld [vmem:[#allocation2 + $0x61] sm:$0xff]  ;;  %v3702_v15 = vld [vmem:[#allocation2 + $0x69] sm:$0xff] }
  0x6c   :  { %3033 = vmatprep.mubr.msk.f32.mxu1 %vm101_vm0, %v391_v46  ;;  %v3710_v16 = vld [vmem:[#allocation2 + $0x70] sm:$0xff]  ;;  %v3716_v18 = vld [vmem:[#allocation2 + $0x78] sm:$0xff]  ;;  %v3726_v20 = vld [vmem:[#allocation2 + $0x80] sm:$0xff] }
  0x6d   :  { %v3714_v17 = vld [vmem:[#allocation2 + $0x71] sm:$0xff]  ;;  %v3718_v19 = vld [vmem:[#allocation2 + $0x79] sm:$0xff]  ;;  %v3730_v21 = vld [vmem:[#allocation2 + $0x81] sm:$0xff] }
  0x6e   :  { %3062 = vmatmul.mubr.msk.f32.vlgmr.msra.gmra.mrb[8].mxu0 %vm101_vm0, %v652_v51  ;;  %v1968_v22 = vld [vmem:[#allocation10 + $0x70] sm:$0xff]  ;;  %v1969_v23 = vld [vmem:[#allocation10 + $0x78] sm:$0xff]  ;;  %v2228_v24 = vld [vmem:[#allocation10 + $0x80] sm:$0xff] }
  0x6f   :  { %3034 = vmatmul.mubr.msk.f32.vlgmr.msra.gmra.mrb[8].mxu1 %vm101_vm0, %v392_v48  ;;  %3272 = vmatpush3.bf16.msra.mxu0 %v3269_v34  ;;  %v2229_v25 = vld [vmem:[#allocation10 + $0x88] sm:$0xff]  ;;  %v3281_v26 = vpack.c.bf16 %v1969_v23, %v1968_v22  ;;  %v3790_v30 = vld [vmem:[#allocation2 + $0x88] sm:$0xff]  ;;  %v3799_v34 = vld [vmem:[#allocation2 + $0x90] sm:$0xff] }
  0x70   :  { %3268 = vmatpush3.bf16.msra.mxu1 %v3265_v29  ;;  %3036 = vmatprep.mubr.msk.f32.mxu1 %vm101_vm0, %v3614_v54  ;;  %v3285_v27 = vpack.c.bf16 %v2229_v25, %v2228_v24  ;;  %v925_v29 = vld [vmem:[#allocation2 + $0x87] sm:$0xff]  ;;  %v926_v31 = vld [vmem:[#allocation2 + $0x8f] sm:$0xff]  ;;  %v2225_v46 = vld [vmem:[#allocation2 + $0x99] sm:$0xff] }
  0x71   :  { %3064 = vmatprep.mubr.msk.f32.mxu0 %vm101_vm0, %v3617_v57  ;;  %3274 = vmatprep.subr.bf16.mxu1 %v3619_v58  ;;  %v1966_v47 = vld [vmem:[#allocation2 + $0xa0] sm:$0xff] }
  0x72   :  { %3278 = vmatprep.subr.bf16.mxu0 %v3621_v59  ;;  %3065 = vmatmul.mubr.msk.f32.gmra.mrb[10].mxu0 %vm101_vm0, %v3630_v61  ;;  %v2226_v48 = vld [vmem:[#allocation2 + $0xa1] sm:$0xff] }
  0x73   :  { %3037 = vmatmul.mubr.msk.f32.gmra.mrb[10].mxu1 %vm101_vm0, %v3628_v60  ;;  %3067 = vmatprep.mubr.msk.f32.mxu0 %vm101_vm0, %v3636_v63 }
  0x74   :  { %3039 = vmatprep.mubr.msk.f32.mxu1 %vm101_vm0, %v3632_v62 }
  0x76   :  { %3068 = vmatmul.mubr.msk.f32.gmra.mrb[12].mxu0 %vm101_vm0, %v3650_v1 }
  0x77   :  { %3040 = vmatmul.mubr.msk.f32.gmra.mrb[12].mxu1 %vm101_vm0, %v3646_v0  ;;  %3070 = vmatprep.mubr.msk.f32.mxu0 %vm101_vm0, %v3654_v3 }
  0x78   :  { %3042 = vmatprep.mubr.msk.f32.mxu1 %vm101_vm0, %v3652_v2 }
  0x7a   :  { %3071 = vmatmul.mubr.msk.f32.gmra.mrb[14].mxu0 %vm101_vm0, %v3666_v5 }
  0x7b   :  { %3043 = vmatmul.mubr.msk.f32.gmra.mrb[14].mxu1 %vm101_vm0, %v3662_v4  ;;  %3073 = vmatprep.mubr.msk.f32.mxu0 %vm101_vm0, %v3670_v7 }
  0x7c   :  { %3045 = vmatprep.mubr.msk.f32.mxu1 %vm101_vm0, %v3668_v6 }
  0x7e   :  { %3074 = vmatmul.mubr.msk.f32.gmra.mrb[16].mxu0 %vm101_vm0, %v3682_v9 }
  0x7f   :  { %3046 = vmatmul.mubr.msk.f32.gmra.mrb[16].mxu1 %vm101_vm0, %v3678_v8  ;;  %3076 = vmatprep.mubr.msk.f32.mxu0 %vm101_vm0, %v3686_v11 }
  0x80   :  { %3048 = vmatprep.mubr.msk.f32.mxu1 %vm101_vm0, %v3684_v10 }
  0x82   :  { %3077 = vmatmul.mubr.msk.f32.gmra.mrb[18].mxu0 %vm101_vm0, %v3698_v13 }
  0x83   :  { %3049 = vmatmul.mubr.msk.f32.gmra.mrb[18].mxu1 %vm101_vm0, %v3694_v12  ;;  %3079 = vmatprep.mubr.msk.f32.mxu0 %vm101_vm0, %v3702_v15 }
  0x84   :  { %3051 = vmatprep.mubr.msk.f32.mxu1 %vm101_vm0, %v3700_v14 }
  0x86   :  { %3080 = vmatmul.mubr.msk.f32.gmra.mrb[20].mxu0 %vm101_vm0, %v3714_v17 }
  0x87   :  { %3052 = vmatmul.mubr.msk.f32.gmra.mrb[20].mxu1 %vm101_vm0, %v3710_v16  ;;  %3082 = vmatprep.mubr.msk.f32.mxu0 %vm101_vm0, %v3718_v19 }
  0x88   :  { %3054 = vmatprep.mubr.msk.f32.mxu1 %vm101_vm0, %v3716_v18 }
  0x8a   :  { %3083 = vmatmul.mubr.msk.f32.gmra.mrb[22].mxu0 %vm101_vm0, %v3730_v21 }
  0x8b   :  { %3055 = vmatmul.mubr.msk.f32.gmra.mrb[22].mxu1 %vm101_vm0, %v3726_v20  ;;  %3117 = vmatprep.mubr.msk.f32.mxu0 %vm101_vm0, %v3614_v54 }
  0x8c   :  { %3089 = vmatprep.mubr.msk.f32.mxu1 %vm101_vm0, %v3572_v37  ;;  %v1445_v37 = vld [vmem:[#allocation2 + $0x89] sm:$0xff] }
  0x8e   :  { %3118 = vmatmul.mubr.msk.f32.vlgmr.msra.gmra.mrb[24].mxu0 %vm101_vm0, %v3628_v60 }
  0x8f   :  { %3090 = vmatmul.mubr.msk.f32.vlgmr.msra.gmra.mrb[24].mxu1 %vm101_vm0, %v3574_v38  ;;  %3280 = vmatpush3.bf16.msra.mxu0 %v3621_v59  ;;  %v1705_v38 = vld [vmem:[#allocation2 + $0x97] sm:$0xff] }
  0x90   :  { %3276 = vmatpush3.bf16.msra.mxu1 %v3619_v58  ;;  %3092 = vmatprep.mubr.msk.f32.mxu1 %vm101_vm0, %v3578_v39 }
  0x91   :  { %3120 = vmatprep.mubr.msk.f32.mxu0 %vm101_vm0, %v3632_v62  ;;  %3282 = vmatprep.subr.bf16.mxu1 %v3281_v26 }
  0x92   :  { %3286 = vmatprep.subr.bf16.mxu0 %v3285_v27  ;;  %3121 = vmatmul.mubr.msk.f32.gmra.mrb[26].mxu0 %vm101_vm0, %v3646_v0 }
  0x93   :  { %3093 = vmatmul.mubr.msk.f32.gmra.mrb[26].mxu1 %vm101_vm0, %v3590_v41  ;;  %3123 = vmatprep.mubr.msk.f32.mxu0 %vm101_vm0, %v3652_v2 }
  0x94   :  { %3095 = vmatprep.mubr.msk.f32.mxu1 %vm101_vm0, %v3594_v43 }
  0x96   :  { %3124 = vmatmul.mubr.msk.f32.gmra.mrb[28].mxu0 %vm101_vm0, %v3662_v4 }
  0x97   :  { %3096 = vmatmul.mubr.msk.f32.gmra.mrb[28].mxu1 %vm101_vm0, %v3606_v45  ;;  %3126 = vmatprep.mubr.msk.f32.mxu0 %vm101_vm0, %v3668_v6 }
  0x98   :  { %3098 = vmatprep.mubr.msk.f32.mxu1 %vm101_vm0, %v3555_v28 }
  0x9a   :  { %3127 = vmatmul.mubr.msk.f32.gmra.mrb[30].mxu0 %vm101_vm0, %v3678_v8 }
  0x9b   :  { %3099 = vmatmul.mubr.msk.f32.gmra.mrb[30].mxu1 %vm101_vm0, %v3560_v32  ;;  %3129 = vmatprep.mubr.msk.f32.mxu0 %vm101_vm0, %v3684_v10 }
  0x9c   :  { %3101 = vmatprep.mubr.msk.f32.mxu1 %vm101_vm0, %v3562_v33 }
  0x9e   :  { %3130 = vmatmul.mubr.msk.f32.gmra.mrb[32].mxu0 %vm101_vm0, %v3694_v12 }
  0x9f   :  { %3102 = vmatmul.mubr.msk.f32.gmra.mrb[32].mxu1 %vm101_vm0, %v3568_v35  ;;  %3132 = vmatprep.mubr.msk.f32.mxu0 %vm101_vm0, %v3700_v14 }
  0xa0   :  { %3104 = vmatprep.mubr.msk.f32.mxu1 %vm101_vm0, %v3570_v36 }
  0xa2   :  { %3133 = vmatmul.mubr.msk.f32.gmra.mrb[34].mxu0 %vm101_vm0, %v3710_v16 }
  0xa3   :  { %3105 = vmatmul.mubr.msk.f32.gmra.mrb[34].mxu1 %vm101_vm0, %v3586_v40  ;;  %3135 = vmatprep.mubr.msk.f32.mxu0 %vm101_vm0, %v3716_v18 }
  0xa4   :  { %3107 = vmatprep.mubr.msk.f32.mxu1 %vm101_vm0, %v3592_v42 }
  0xa6   :  { %3136 = vmatmul.mubr.msk.f32.gmra.mrb[36].mxu0 %vm101_vm0, %v3726_v20 }
  0xa7   :  { %3108 = vmatmul.mubr.msk.f32.gmra.mrb[36].mxu1 %vm101_vm0, %v3602_v44  ;;  %3138 = vmatprep.mubr.msk.f32.mxu0 %vm101_vm0, %v3790_v30 }
  0xa8   :  { %3110 = vmatprep.mubr.msk.f32.mxu1 %vm101_vm0, %v925_v29 }
  0xaa   :  { %3139 = vmatmul.mubr.msk.f32.gmra.mrb[38].mxu0 %vm101_vm0, %v3799_v34 }
  0xab   :  { %3111 = vmatmul.mubr.msk.f32.gmra.mrb[38].mxu1 %vm101_vm0, %v926_v31  ;;  %3173 = vmatprep.mubr.msk.f32.mxu0 %vm101_vm0, %v3578_v39  ;;  %v2836_v39 = vld [vmem:[%s4173_s5 + $0x5] ss:$0 sm:$0xff] }
  0xac   :  { %3145 = vmatprep.mubr.msk.f32.mxu1 %vm101_vm0, %v3617_v57 }
  0xae   :  { %3174 = vmatmul.mubr.msk.f32.vlgmr.msra.gmra.mrb[40].mxu0 %vm101_vm0, %v3590_v41  ;;  %v1446_v41 = vld [vmem:[#allocation2 + $0x91] sm:$0xff] }
  0xaf   :  { %3146 = vmatmul.mubr.msk.f32.vlgmr.msra.gmra.mrb[40].mxu1 %vm101_vm0, %v3630_v61  ;;  %3288 = vmatpush3.bf16.msra.mxu0 %v3285_v27 }
  0xb0   :  { %3284 = vmatpush3.bf16.msra.mxu1 %v3281_v26  ;;  %3148 = vmatprep.mubr.msk.f32.mxu1 %vm101_vm0, %v3636_v63 }
  0xb1   :  { %3176 = vmatprep.mubr.msk.f32.mxu0 %vm101_vm0, %v3594_v43  ;;  %v2838_v43 = vld [vmem:[%s4173_s5 + $0x7] ss:$0 sm:$0xff] }
  0xb2   :  { %3177 = vmatmul.mubr.msk.f32.gmra.mrb[42].mxu0 %vm101_vm0, %v3606_v45  ;;  %v1965_v45 = vld [vmem:[#allocation2 + $0x98] sm:$0xff] }
  0xb3   :  { %3149 = vmatmul.mubr.msk.f32.gmra.mrb[42].mxu1 %vm101_vm0, %v3650_v1  ;;  %3179 = vmatprep.mubr.msk.f32.mxu0 %vm101_vm0, %v3555_v28  ;;  %v2831_v28 = vld [vmem:[%s4173_s5] ss:$0 sm:$0xff] }
  0xb4   :  { %3151 = vmatprep.mubr.msk.f32.mxu1 %vm101_vm0, %v3654_v3 }
  0xb6   :  { %3180 = vmatmul.mubr.msk.f32.gmra.mrb[44].mxu0 %vm101_vm0, %v3560_v32  ;;  %v3430_v32 = vmov 0  }
  0xb7   :  { %3152 = vmatmul.mubr.msk.f32.gmra.mrb[44].mxu1 %vm101_vm0, %v3666_v5  ;;  %3182 = vmatprep.mubr.msk.f32.mxu0 %vm101_vm0, %v3562_v33  ;;  %v2833_v33 = vld [vmem:[%s4173_s5 + $0x2] ss:$0 sm:$0xff] }
  0xb8   :  { %3154 = vmatprep.mubr.msk.f32.mxu1 %vm101_vm0, %v3670_v7  ;;  %3300 = vset.pattern.permute.xlu0 %v3430_v32 }
  0xb9   :  { %3301 = vset.pattern.permute.xlu1 %v3430_v32  ;;  %2600 = vperm.xlu0 %3300, %v2831_v28  }
  0xba   :  { %3183 = vmatmul.mubr.msk.f32.gmra.mrb[46].mxu0 %vm101_vm0, %v3568_v35  ;;  %v2832_v35 = vld [vmem:[%s4173_s5 + $0x1] ss:$0 sm:$0xff]  ;;  %2608 = vperm.xlu1 %3301, %v2833_v33  }
  0xbb   :  { %3155 = vmatmul.mubr.msk.f32.gmra.mrb[46].mxu1 %vm101_vm0, %v3682_v9  ;;  %3185 = vmatprep.mubr.msk.f32.mxu0 %vm101_vm0, %v3570_v36  ;;  %v2834_v36 = vld [vmem:[%s4173_s5 + $0x3] ss:$0 sm:$0xff] }
  0xbc   :  { %3157 = vmatprep.mubr.msk.f32.mxu1 %vm101_vm0, %v3686_v11 }
  0xbd   :  { %2604 = vperm.xlu0 %3300, %v2832_v35  }
  0xbe   :  { %3186 = vmatmul.mubr.msk.f32.gmra.mrb[48].mxu0 %vm101_vm0, %v3586_v40  ;;  %2612 = vperm.xlu1 %3301, %v2834_v36   ;;  %v2835_v40 = vld [vmem:[%s4173_s5 + $0x4] ss:$0 sm:$0xff] }
  0xbf   :  { %3158 = vmatmul.mubr.msk.f32.gmra.mrb[48].mxu1 %vm101_vm0, %v3698_v13  ;;  %3188 = vmatprep.mubr.msk.f32.mxu0 %vm101_vm0, %v3592_v42  ;;  %v1706_v42 = vld [vmem:[#allocation2 + $0x9f] sm:$0xff] }
  0xc0   :  { %3160 = vmatprep.mubr.msk.f32.mxu1 %vm101_vm0, %v3702_v15 }
  0xc1   :  { %2616 = vperm.xlu0 %3300, %v2835_v40  }
  0xc2   :  { %3189 = vmatmul.mubr.msk.f32.gmra.mrb[50].mxu0 %vm101_vm0, %v3602_v44  ;;  %2620 = vperm.xlu1 %3301, %v2836_v39   ;;  %v2837_v44 = vld [vmem:[%s4173_s5 + $0x6] ss:$0 sm:$0xff] }
  0xc3   :  { %3161 = vmatmul.mubr.msk.f32.gmra.mrb[50].mxu1 %vm101_vm0, %v3714_v17  ;;  %3191 = vmatprep.mubr.msk.f32.mxu0 %vm101_vm0, %v925_v29 }
  0xc4   :  { %3163 = vmatprep.mubr.msk.f32.mxu1 %vm101_vm0, %v3718_v19 }
  0xc5   :  { %2624 = vperm.xlu0 %3300, %v2837_v44  }
  0xc6   :  { %3192 = vmatmul.mubr.msk.f32.gmra.mrb[52].mxu0 %vm101_vm0, %v926_v31  ;;  %2628 = vperm.xlu1 %3301, %v2838_v43  }
  0xc7   :  { %3164 = vmatmul.mubr.msk.f32.gmra.mrb[52].mxu1 %vm101_vm0, %v3730_v21  ;;  %3194 = vmatprep.mubr.msk.f32.mxu0 %vm101_vm0, %v1705_v38 }
  0xc8   :  { %3166 = vmatprep.mubr.msk.f32.mxu1 %vm101_vm0, %v1445_v37 }
  0xca   :  { %3195 = vmatmul.mubr.msk.f32.gmra.mrb[54].mxu0 %vm101_vm0, %v1706_v42 }
  0xcb   :  { %3167 = vmatmul.mubr.msk.f32.gmra.mrb[54].mxu1 %vm101_vm0, %v1446_v41  ;;  %3229 = vmatprep.mubr.msk.f32.mxu0 %vm101_vm0, %v3636_v63 }
  0xcc   :  { %3201 = vmatprep.mubr.msk.f32.mxu1 %vm101_vm0, %v3632_v62 }
  0xce   :  { %3230 = vmatmul.mubr.msk.f32.vlgmr.msra.gmra.mrb[56].mxu0 %vm101_vm0, %v3650_v1 }
  0xcf   :  { %3202 = vmatmul.mubr.msk.f32.vlgmr.msra.gmra.mrb[56].mxu1 %vm101_vm0, %v3646_v0  ;;  %3232 = vmatprep.mubr.msk.f32.mxu0 %vm101_vm0, %v3654_v3 }
  0xd0   :  { %3204 = vmatprep.mubr.msk.f32.mxu1 %vm101_vm0, %v3652_v2 }
  0xd2   :  { %3233 = vmatmul.mubr.msk.f32.gmra.mrb[58].mxu0 %vm101_vm0, %v3666_v5 }
  0xd3   :  { %3205 = vmatmul.mubr.msk.f32.gmra.mrb[58].mxu1 %vm101_vm0, %v3662_v4  ;;  %3235 = vmatprep.mubr.msk.f32.mxu0 %vm101_vm0, %v3670_v7 }
  0xd4   :  { %3207 = vmatprep.mubr.msk.f32.mxu1 %vm101_vm0, %v3668_v6 }
  0xd6   :  { %3236 = vmatmul.mubr.msk.f32.gmra.mrb[60].mxu0 %vm101_vm0, %v3682_v9 }
  0xd7   :  { %3208 = vmatmul.mubr.msk.f32.gmra.mrb[60].mxu1 %vm101_vm0, %v3678_v8  ;;  %3238 = vmatprep.mubr.msk.f32.mxu0 %vm101_vm0, %v3686_v11 }
  0xd8   :  { %3210 = vmatprep.mubr.msk.f32.mxu1 %vm101_vm0, %v3684_v10 }
  0xda   :  { %3239 = vmatmul.mubr.msk.f32.gmra.mrb[62].mxu0 %vm101_vm0, %v3698_v13 }
  0xdb   :  { %3211 = vmatmul.mubr.msk.f32.gmra.mrb[62].mxu1 %vm101_vm0, %v3694_v12  ;;  %3241 = vmatprep.mubr.msk.f32.mxu0 %vm101_vm0, %v3702_v15 }
  0xdc   :  { %3213 = vmatprep.mubr.msk.f32.mxu1 %vm101_vm0, %v3700_v14 }
  0xde   :  { %3242 = vmatmul.mubr.msk.f32.gmra.mrb[64].mxu0 %vm101_vm0, %v3714_v17 }
  0xdf   :  { %3214 = vmatmul.mubr.msk.f32.gmra.mrb[64].mxu1 %vm101_vm0, %v3710_v16  ;;  %3244 = vmatprep.mubr.msk.f32.mxu0 %vm101_vm0, %v3718_v19 }
  0xe0   :  { %3216 = vmatprep.mubr.msk.f32.mxu1 %vm101_vm0, %v3716_v18 }
  0xe2   :  { %3245 = vmatmul.mubr.msk.f32.gmra.mrb[66].mxu0 %vm101_vm0, %v3730_v21 }
  0xe3   :  { %3217 = vmatmul.mubr.msk.f32.gmra.mrb[66].mxu1 %vm101_vm0, %v3726_v20  ;;  %3247 = vmatprep.mubr.msk.f32.mxu0 %vm101_vm0, %v1445_v37 }
  0xe4   :  { %3219 = vmatprep.mubr.msk.f32.mxu1 %vm101_vm0, %v3790_v30 }
  0xe6   :  { %3248 = vmatmul.mubr.msk.f32.gmra.mrb[68].mxu0 %vm101_vm0, %v1446_v41 }
  0xe7   :  { %3220 = vmatmul.mubr.msk.f32.gmra.mrb[68].mxu1 %vm101_vm0, %v3799_v34  ;;  %3250 = vmatprep.mubr.msk.f32.mxu0 %vm101_vm0, %v2225_v46 }
  0xe8   :  { %3222 = vmatprep.mubr.msk.f32.mxu1 %vm101_vm0, %v1965_v45 }
  0xea   :  { %3251 = vmatmul.mubr.msk.f32.gmra.mrb[70].mxu0 %vm101_vm0, %v2226_v48 }
  0xeb   :  { %3223 = vmatmul.mubr.msk.f32.gmra.mrb[70].mxu1 %vm101_vm0, %v1966_v47 }
 0x12e   :  { %v3007_v49 = vpop.f32.mrb[0].mxu0 }
 0x12f   :  { %376 = vst.msk [vmem:[#allocation3 + $0x8] sm:$0xff] %vm374_vm1, %v3007_v49  ;;  %v295_v50 = vpop.f32.mrb[1].mxu0 }
 0x130   :  { %375 = vst.msk [vmem:[#allocation3] sm:$0xff] %vm374_vm1, %v295_v50 }
 0x132   :  { %v3019_v51 = vpop.f32.mrb[0].mxu1 }
 0x133   :  { %384 = vst.msk [vmem:[#allocation3 + $0x48] sm:$0xff] %vm374_vm1, %v3019_v51  ;;  %v335_v52 = vpop.f32.mrb[1].mxu1 }
 0x134   :  { %383 = vst.msk [vmem:[#allocation3 + $0x40] sm:$0xff] %vm374_vm1, %v335_v52 }
 0x135   :  { %v3010_v54 = vpop.f32.mrb[2].mxu0 }
 0x136   :  { %v3022_v53 = vpop.f32.mrb[2].mxu1  ;;  %378 = vst.msk [vmem:[#allocation3 + $0x18] sm:$0xff] %vm374_vm1, %v3010_v54  ;;  %v305_v56 = vpop.f32.mrb[3].mxu0  ;;  %v604_v1 = vld [vmem:[#allocation3 + $0x8] sm:$0xff] }
 0x137   :  { %386 = vst.msk [vmem:[#allocation3 + $0x58] sm:$0xff] %vm374_vm1, %v3022_v53  ;;  %v345_v55 = vpop.f32.mrb[3].mxu1  ;;  %377 = vst.msk [vmem:[#allocation3 + $0x10] sm:$0xff] %vm374_vm1, %v305_v56  ;;  %v603_v2 = vld [vmem:[#allocation3] sm:$0xff] }
 0x138   :  { %385 = vst.msk [vmem:[#allocation3 + $0x50] sm:$0xff] %vm374_vm1, %v345_v55 }
 0x139   :  { %v3013_v58 = vpop.f32.mrb[4].mxu0 }
 0x13a   :  { %v3025_v57 = vpop.f32.mrb[4].mxu1  ;;  %380 = vst.msk [vmem:[#allocation3 + $0x28] sm:$0xff] %vm374_vm1, %v3013_v58  ;;  %v315_v60 = vpop.f32.mrb[5].mxu0  ;;  %v612_v42 = vld [vmem:[#allocation3 + $0x48] sm:$0xff] }
 0x13b   :  { %388 = vst.msk [vmem:[#allocation3 + $0x68] sm:$0xff] %vm374_vm1, %v3025_v57  ;;  %v355_v59 = vpop.f32.mrb[5].mxu1  ;;  %379 = vst.msk [vmem:[#allocation3 + $0x20] sm:$0xff] %vm374_vm1, %v315_v60  ;;  %v611_v46 = vld [vmem:[#allocation3 + $0x40] sm:$0xff] }
 0x13c   :  { %387 = vst.msk [vmem:[#allocation3 + $0x60] sm:$0xff] %vm374_vm1, %v355_v59 }
 0x13d   :  { %v3016_v62 = vpop.f32.mrb[6].mxu0  ;;  %v606_v9 = vld [vmem:[#allocation3 + $0x18] sm:$0xff] }
 0x13e   :  { %v3028_v61 = vpop.f32.mrb[6].mxu1  ;;  %382 = vst.msk [vmem:[#allocation3 + $0x38] sm:$0xff] %vm374_vm1, %v3016_v62  ;;  %v325_v0 = vpop.f32.mrb[7].mxu0  ;;  %v605_v10 = vld [vmem:[#allocation3 + $0x10] sm:$0xff]  ;;  %v614_v54 = vld [vmem:[#allocation3 + $0x58] sm:$0xff] }
 0x13f   :  { %390 = vst.msk [vmem:[#allocation3 + $0x78] sm:$0xff] %vm374_vm1, %v3028_v61  ;;  %v365_v63 = vpop.f32.mrb[7].mxu1  ;;  %381 = vst.msk [vmem:[#allocation3 + $0x30] sm:$0xff] %vm374_vm1, %v325_v0  ;;  %v613_v58 = vld [vmem:[#allocation3 + $0x50] sm:$0xff] }
 0x140   :  { %389 = vst.msk [vmem:[#allocation3 + $0x70] sm:$0xff] %vm374_vm1, %v365_v63 }
 0x141   :  { %v3063_v4 = vpop.f32.mrb[8].mxu0  ;;  %v608_v17 = vld [vmem:[#allocation3 + $0x28] sm:$0xff] }
 0x142   :  { %v3035_v3 = vpop.f32.mrb[8].mxu1  ;;  %v784_v7 = vpop.f32.mrb[9].mxu0  ;;  %v607_v18 = vld [vmem:[#allocation3 + $0x20] sm:$0xff] }
 0x143   :  { %v620_v5 = vadd.f32 %v3035_v3, %v604_v1  ;;  %v524_v6 = vpop.f32.mrb[9].mxu1 }
 0x144   :  { %v619_v8 = vadd.f32 %v603_v2, %v524_v6  ;;  %v616_v2 = vld [vmem:[#allocation3 + $0x68] sm:$0xff]  ;;  %v615_v6 = vld [vmem:[#allocation3 + $0x60] sm:$0xff] }
 0x145   :  { %636 = vst.msk [vmem:[#allocation3 + $0x8] sm:$0xff] %vm374_vm1, %v620_v5  ;;  %v3066_v12 = vpop.f32.mrb[10].mxu0  ;;  %v610_v26 = vld [vmem:[#allocation3 + $0x38] sm:$0xff] }
 0x146   :  { %635 = vst.msk [vmem:[#allocation3] sm:$0xff] %vm374_vm1, %v619_v8  ;;  %v3038_v11 = vpop.f32.mrb[10].mxu1  ;;  %v794_v15 = vpop.f32.mrb[11].mxu0  ;;  %v609_v30 = vld [vmem:[#allocation3 + $0x30] sm:$0xff] }
 0x147   :  { %v622_v13 = vadd.f32 %v3038_v11, %v606_v9  ;;  %v534_v14 = vpop.f32.mrb[11].mxu1 }
 0x148   :  { %v621_v16 = vadd.f32 %v605_v10, %v534_v14  ;;  %v618_v14 = vld [vmem:[#allocation3 + $0x78] sm:$0xff] }
 0x149   :  { %638 = vst.msk [vmem:[#allocation3 + $0x18] sm:$0xff] %vm374_vm1, %v622_v13  ;;  %v3069_v20 = vpop.f32.mrb[12].mxu0 }
 0x14a   :  { %637 = vst.msk [vmem:[#allocation3 + $0x10] sm:$0xff] %vm374_vm1, %v621_v16  ;;  %v3041_v19 = vpop.f32.mrb[12].mxu1  ;;  %v804_v23 = vpop.f32.mrb[13].mxu0 }
 0x14b   :  { %v624_v21 = vadd.f32 %v3041_v19, %v608_v17  ;;  %v544_v22 = vpop.f32.mrb[13].mxu1 }
 0x14c   :  { %v623_v24 = vadd.f32 %v607_v18, %v544_v22  ;;  %v864_v25 = vld [vmem:[#allocation3 + $0x8] sm:$0xff]  ;;  %v617_v18 = vld [vmem:[#allocation3 + $0x70] sm:$0xff] }
 0x14d   :  { %640 = vst.msk [vmem:[#allocation3 + $0x28] sm:$0xff] %vm374_vm1, %v624_v21  ;;  %v880_v27 = vadd.f32 %v3063_v4, %v864_v25  ;;  %v863_v29 = vld [vmem:[#allocation3] sm:$0xff]  ;;  %v3072_v28 = vpop.f32.mrb[14].mxu0 }
 0x14e   :  { %639 = vst.msk [vmem:[#allocation3 + $0x20] sm:$0xff] %vm374_vm1, %v623_v24  ;;  %v879_v31 = vadd.f32 %v863_v29, %v784_v7  ;;  %v3044_v34 = vpop.f32.mrb[14].mxu1  ;;  %v814_v35 = vpop.f32.mrb[15].mxu0 }
 0x14f   :  { %896 = vst.msk [vmem:[#allocation3 + $0x8] sm:$0xff] %vm374_vm1, %v880_v27  ;;  %v626_v32 = vadd.f32 %v3044_v34, %v610_v26  ;;  %v554_v33 = vpop.f32.mrb[15].mxu1 }
 0x150   :  { %895 = vst.msk [vmem:[#allocation3] sm:$0xff] %vm374_vm1, %v879_v31  ;;  %v625_v36 = vadd.f32 %v609_v30, %v554_v33  ;;  %v866_v37 = vld [vmem:[#allocation3 + $0x18] sm:$0xff] }
 0x151   :  { %642 = vst.msk [vmem:[#allocation3 + $0x38] sm:$0xff] %vm374_vm1, %v626_v32  ;;  %v882_v38 = vadd.f32 %v3066_v12, %v866_v37  ;;  %v865_v39 = vld [vmem:[#allocation3 + $0x10] sm:$0xff]  ;;  %v3075_v43 = vpop.f32.mrb[16].mxu0 }
 0x152   :  { %641 = vst.msk [vmem:[#allocation3 + $0x30] sm:$0xff] %vm374_vm1, %v625_v36  ;;  %v881_v40 = vadd.f32 %v865_v39, %v794_v15  ;;  %v3047_v41 = vpop.f32.mrb[16].mxu1  ;;  %v824_v47 = vpop.f32.mrb[17].mxu0 }
 0x153   :  { %898 = vst.msk [vmem:[#allocation3 + $0x18] sm:$0xff] %vm374_vm1, %v882_v38  ;;  %v628_v44 = vadd.f32 %v3047_v41, %v612_v42  ;;  %v564_v45 = vpop.f32.mrb[17].mxu1 }
 0x154   :  { %897 = vst.msk [vmem:[#allocation3 + $0x10] sm:$0xff] %vm374_vm1, %v881_v40  ;;  %v627_v48 = vadd.f32 %v611_v46, %v564_v45  ;;  %v868_v49 = vld [vmem:[#allocation3 + $0x28] sm:$0xff] }
 0x155   :  { %644 = vst.msk [vmem:[#allocation3 + $0x48] sm:$0xff] %vm374_vm1, %v628_v44  ;;  %v884_v50 = vadd.f32 %v3069_v20, %v868_v49  ;;  %v867_v51 = vld [vmem:[#allocation3 + $0x20] sm:$0xff]  ;;  %v3078_v55 = vpop.f32.mrb[18].mxu0 }
 0x156   :  { %643 = vst.msk [vmem:[#allocation3 + $0x40] sm:$0xff] %vm374_vm1, %v627_v48  ;;  %v883_v52 = vadd.f32 %v867_v51, %v804_v23  ;;  %v3050_v53 = vpop.f32.mrb[18].mxu1  ;;  %v834_v59 = vpop.f32.mrb[19].mxu0  ;;  %v1124_v26 = vld [vmem:[#allocation3 + $0x8] sm:$0xff] }
 0x157   :  { %900 = vst.msk [vmem:[#allocation3 + $0x28] sm:$0xff] %vm374_vm1, %v884_v50  ;;  %v630_v56 = vadd.f32 %v3050_v53, %v614_v54  ;;  %v574_v57 = vpop.f32.mrb[19].mxu1  ;;  %v1123_v31 = vld [vmem:[#allocation3] sm:$0xff] }
 0x158   :  { %899 = vst.msk [vmem:[#allocation3 + $0x20] sm:$0xff] %vm374_vm1, %v883_v52  ;;  %v629_v60 = vadd.f32 %v613_v58, %v574_v57  ;;  %v870_v61 = vld [vmem:[#allocation3 + $0x38] sm:$0xff] }
 0x159   :  { %646 = vst.msk [vmem:[#allocation3 + $0x58] sm:$0xff] %vm374_vm1, %v630_v56  ;;  %v886_v62 = vadd.f32 %v3072_v28, %v870_v61  ;;  %v869_v63 = vld [vmem:[#allocation3 + $0x30] sm:$0xff]  ;;  %v3081_v3 = vpop.f32.mrb[20].mxu0 }
 0x15a   :  { %645 = vst.msk [vmem:[#allocation3 + $0x50] sm:$0xff] %vm374_vm1, %v629_v60  ;;  %v885_v0 = vadd.f32 %v869_v63, %v814_v35  ;;  %v3053_v1 = vpop.f32.mrb[20].mxu1  ;;  %v844_v7 = vpop.f32.mrb[21].mxu0  ;;  %v1126_v38 = vld [vmem:[#allocation3 + $0x18] sm:$0xff] }
 0x15b   :  { %902 = vst.msk [vmem:[#allocation3 + $0x38] sm:$0xff] %vm374_vm1, %v886_v62  ;;  %v632_v4 = vadd.f32 %v3053_v1, %v616_v2  ;;  %v584_v5 = vpop.f32.mrb[21].mxu1  ;;  %v1125_v42 = vld [vmem:[#allocation3 + $0x10] sm:$0xff] }
 0x15c   :  { %901 = vst.msk [vmem:[#allocation3 + $0x30] sm:$0xff] %vm374_vm1, %v885_v0  ;;  %v631_v8 = vadd.f32 %v615_v6, %v584_v5  ;;  %v872_v9 = vld [vmem:[#allocation3 + $0x48] sm:$0xff] }
 0x15d   :  { %648 = vst.msk [vmem:[#allocation3 + $0x68] sm:$0xff] %vm374_vm1, %v632_v4  ;;  %v888_v10 = vadd.f32 %v3075_v43, %v872_v9  ;;  %v871_v11 = vld [vmem:[#allocation3 + $0x40] sm:$0xff]  ;;  %v3084_v15 = vpop.f32.mrb[22].mxu0 }
 0x15e   :  { %647 = vst.msk [vmem:[#allocation3 + $0x60] sm:$0xff] %vm374_vm1, %v631_v8  ;;  %v887_v12 = vadd.f32 %v871_v11, %v824_v47  ;;  %v3056_v13 = vpop.f32.mrb[22].mxu1  ;;  %v854_v19 = vpop.f32.mrb[23].mxu0  ;;  %v1128_v50 = vld [vmem:[#allocation3 + $0x28] sm:$0xff] }
 0x15f   :  { %904 = vst.msk [vmem:[#allocation3 + $0x48] sm:$0xff] %vm374_vm1, %v888_v10  ;;  %v634_v16 = vadd.f32 %v3056_v13, %v618_v14  ;;  %v594_v17 = vpop.f32.mrb[23].mxu1  ;;  %v1127_v54 = vld [vmem:[#allocation3 + $0x20] sm:$0xff] }
 0x160   :  { %903 = vst.msk [vmem:[#allocation3 + $0x40] sm:$0xff] %vm374_vm1, %v887_v12  ;;  %v633_v20 = vadd.f32 %v617_v18, %v594_v17  ;;  %v874_v21 = vld [vmem:[#allocation3 + $0x58] sm:$0xff] }
 0x161   :  { %650 = vst.msk [vmem:[#allocation3 + $0x78] sm:$0xff] %vm374_vm1, %v634_v16  ;;  %v890_v22 = vadd.f32 %v3078_v55, %v874_v21  ;;  %v873_v23 = vld [vmem:[#allocation3 + $0x50] sm:$0xff]  ;;  %v3119_v27 = vpop.f32.mrb[24].mxu0 }
 0x162   :  { %649 = vst.msk [vmem:[#allocation3 + $0x70] sm:$0xff] %vm374_vm1, %v633_v20  ;;  %v889_v24 = vadd.f32 %v873_v23, %v834_v59  ;;  %v3091_v25 = vpop.f32.mrb[24].mxu1  ;;  %v1304_v34 = vpop.f32.mrb[25].mxu0  ;;  %v1130_v62 = vld [vmem:[#allocation3 + $0x38] sm:$0xff] }
 0x163   :  { %906 = vst.msk [vmem:[#allocation3 + $0x58] sm:$0xff] %vm374_vm1, %v890_v22  ;;  %v1140_v29 = vadd.f32 %v3091_v25, %v1124_v26  ;;  %v1044_v30 = vpop.f32.mrb[25].mxu1  ;;  %v1129_v2 = vld [vmem:[#allocation3 + $0x30] sm:$0xff] }
 0x164   :  { %905 = vst.msk [vmem:[#allocation3 + $0x50] sm:$0xff] %vm374_vm1, %v889_v24  ;;  %v876_v28 = vld [vmem:[#allocation3 + $0x68] sm:$0xff]  ;;  %v1139_v32 = vadd.f32 %v1123_v31, %v1044_v30 }
 0x165   :  { %1156 = vst.msk [vmem:[#allocation3 + $0x8] sm:$0xff] %vm374_vm1, %v1140_v29  ;;  %v892_v33 = vadd.f32 %v3081_v3, %v876_v28  ;;  %v875_v35 = vld [vmem:[#allocation3 + $0x60] sm:$0xff]  ;;  %v3122_v39 = vpop.f32.mrb[26].mxu0 }
 0x166   :  { %1155 = vst.msk [vmem:[#allocation3] sm:$0xff] %vm374_vm1, %v1139_v32  ;;  %v891_v36 = vadd.f32 %v875_v35, %v844_v7  ;;  %v3094_v37 = vpop.f32.mrb[26].mxu1  ;;  %v1314_v43 = vpop.f32.mrb[27].mxu0  ;;  %v1132_v10 = vld [vmem:[#allocation3 + $0x48] sm:$0xff] }
 0x167   :  { %908 = vst.msk [vmem:[#allocation3 + $0x68] sm:$0xff] %vm374_vm1, %v892_v33  ;;  %v1142_v40 = vadd.f32 %v3094_v37, %v1126_v38  ;;  %v1054_v41 = vpop.f32.mrb[27].mxu1  ;;  %v1131_v14 = vld [vmem:[#allocation3 + $0x40] sm:$0xff] }
 0x168   :  { %907 = vst.msk [vmem:[#allocation3 + $0x60] sm:$0xff] %vm374_vm1, %v891_v36  ;;  %v878_v44 = vld [vmem:[#allocation3 + $0x78] sm:$0xff]  ;;  %v1141_v45 = vadd.f32 %v1125_v42, %v1054_v41 }
 0x169   :  { %1158 = vst.msk [vmem:[#allocation3 + $0x18] sm:$0xff] %vm374_vm1, %v1142_v40  ;;  %v894_v46 = vadd.f32 %v3084_v15, %v878_v44  ;;  %v877_v47 = vld [vmem:[#allocation3 + $0x70] sm:$0xff]  ;;  %v3125_v51 = vpop.f32.mrb[28].mxu0 }
 0x16a   :  { %1157 = vst.msk [vmem:[#allocation3 + $0x10] sm:$0xff] %vm374_vm1, %v1141_v45  ;;  %v893_v48 = vadd.f32 %v877_v47, %v854_v19  ;;  %v3097_v49 = vpop.f32.mrb[28].mxu1  ;;  %v1324_v55 = vpop.f32.mrb[29].mxu0  ;;  %v1134_v22 = vld [vmem:[#allocation3 + $0x58] sm:$0xff] }
 0x16b   :  { %910 = vst.msk [vmem:[#allocation3 + $0x78] sm:$0xff] %vm374_vm1, %v894_v46  ;;  %v1144_v52 = vadd.f32 %v3097_v49, %v1128_v50  ;;  %v1064_v53 = vpop.f32.mrb[29].mxu1  ;;  %v1133_v26 = vld [vmem:[#allocation3 + $0x50] sm:$0xff] }
 0x16c   :  { %909 = vst.msk [vmem:[#allocation3 + $0x70] sm:$0xff] %vm374_vm1, %v893_v48  ;;  %v1143_v56 = vadd.f32 %v1127_v54, %v1064_v53  ;;  %v1384_v57 = vld [vmem:[#allocation3 + $0x8] sm:$0xff] }
 0x16d   :  { %1160 = vst.msk [vmem:[#allocation3 + $0x28] sm:$0xff] %vm374_vm1, %v1144_v52  ;;  %v1400_v58 = vadd.f32 %v3119_v27, %v1384_v57  ;;  %v1383_v59 = vld [vmem:[#allocation3] sm:$0xff]  ;;  %v3128_v63 = vpop.f32.mrb[30].mxu0 }
 0x16e   :  { %1159 = vst.msk [vmem:[#allocation3 + $0x20] sm:$0xff] %vm374_vm1, %v1143_v56  ;;  %v1399_v60 = vadd.f32 %v1383_v59, %v1304_v34  ;;  %v3100_v61 = vpop.f32.mrb[30].mxu1  ;;  %v1334_v3 = vpop.f32.mrb[31].mxu0  ;;  %v1136_v33 = vld [vmem:[#allocation3 + $0x68] sm:$0xff] }
 0x16f   :  { %1416 = vst.msk [vmem:[#allocation3 + $0x8] sm:$0xff] %vm374_vm1, %v1400_v58  ;;  %v1146_v0 = vadd.f32 %v3100_v61, %v1130_v62  ;;  %v1074_v1 = vpop.f32.mrb[31].mxu1  ;;  %v1135_v38 = vld [vmem:[#allocation3 + $0x60] sm:$0xff] }
 0x170   :  { %1415 = vst.msk [vmem:[#allocation3] sm:$0xff] %vm374_vm1, %v1399_v60  ;;  %v1145_v4 = vadd.f32 %v1129_v2, %v1074_v1  ;;  %v1386_v5 = vld [vmem:[#allocation3 + $0x18] sm:$0xff] }
 0x171   :  { %1162 = vst.msk [vmem:[#allocation3 + $0x38] sm:$0xff] %vm374_vm1, %v1146_v0  ;;  %v1402_v6 = vadd.f32 %v3122_v39, %v1386_v5  ;;  %v1385_v7 = vld [vmem:[#allocation3 + $0x10] sm:$0xff]  ;;  %v3131_v11 = vpop.f32.mrb[32].mxu0 }
 0x172   :  { %1161 = vst.msk [vmem:[#allocation3 + $0x30] sm:$0xff] %vm374_vm1, %v1145_v4  ;;  %v1401_v8 = vadd.f32 %v1385_v7, %v1314_v43  ;;  %v3103_v9 = vpop.f32.mrb[32].mxu1  ;;  %v1344_v15 = vpop.f32.mrb[33].mxu0  ;;  %v1138_v46 = vld [vmem:[#allocation3 + $0x78] sm:$0xff] }
 0x173   :  { %1418 = vst.msk [vmem:[#allocation3 + $0x18] sm:$0xff] %vm374_vm1, %v1402_v6  ;;  %v1148_v12 = vadd.f32 %v3103_v9, %v1132_v10  ;;  %v1084_v13 = vpop.f32.mrb[33].mxu1  ;;  %v1137_v50 = vld [vmem:[#allocation3 + $0x70] sm:$0xff] }
 0x174   :  { %1417 = vst.msk [vmem:[#allocation3 + $0x10] sm:$0xff] %vm374_vm1, %v1401_v8  ;;  %v1147_v16 = vadd.f32 %v1131_v14, %v1084_v13  ;;  %v1388_v17 = vld [vmem:[#allocation3 + $0x28] sm:$0xff] }
 0x175   :  { %1164 = vst.msk [vmem:[#allocation3 + $0x48] sm:$0xff] %vm374_vm1, %v1148_v12  ;;  %v1404_v18 = vadd.f32 %v3125_v51, %v1388_v17  ;;  %v1387_v19 = vld [vmem:[#allocation3 + $0x20] sm:$0xff]  ;;  %v3134_v23 = vpop.f32.mrb[34].mxu0 }
 0x176   :  { %1163 = vst.msk [vmem:[#allocation3 + $0x40] sm:$0xff] %vm374_vm1, %v1147_v16  ;;  %v1403_v20 = vadd.f32 %v1387_v19, %v1324_v55  ;;  %v3106_v21 = vpop.f32.mrb[34].mxu1  ;;  %v1354_v27 = vpop.f32.mrb[35].mxu0  ;;  %v1644_v58 = vld [vmem:[#allocation3 + $0x8] sm:$0xff] }
 0x177   :  { %1420 = vst.msk [vmem:[#allocation3 + $0x28] sm:$0xff] %vm374_vm1, %v1404_v18  ;;  %v1150_v24 = vadd.f32 %v3106_v21, %v1134_v22  ;;  %v1094_v25 = vpop.f32.mrb[35].mxu1  ;;  %v1643_v62 = vld [vmem:[#allocation3] sm:$0xff] }
 0x178   :  { %1419 = vst.msk [vmem:[#allocation3 + $0x20] sm:$0xff] %vm374_vm1, %v1403_v20  ;;  %v1149_v29 = vadd.f32 %v1133_v26, %v1094_v25  ;;  %v1390_v30 = vld [vmem:[#allocation3 + $0x38] sm:$0xff] }
 0x179   :  { %1166 = vst.msk [vmem:[#allocation3 + $0x58] sm:$0xff] %vm374_vm1, %v1150_v24  ;;  %v1406_v31 = vadd.f32 %v3128_v63, %v1390_v30  ;;  %v1389_v34 = vld [vmem:[#allocation3 + $0x30] sm:$0xff]  ;;  %v3137_v35 = vpop.f32.mrb[36].mxu0 }
 0x17a   :  { %1165 = vst.msk [vmem:[#allocation3 + $0x50] sm:$0xff] %vm374_vm1, %v1149_v29  ;;  %v1405_v28 = vadd.f32 %v1389_v34, %v1334_v3  ;;  %v3109_v32 = vpop.f32.mrb[36].mxu1  ;;  %v1364_v39 = vpop.f32.mrb[37].mxu0  ;;  %v1646_v6 = vld [vmem:[#allocation3 + $0x18] sm:$0xff] }
 0x17b   :  { %1422 = vst.msk [vmem:[#allocation3 + $0x38] sm:$0xff] %vm374_vm1, %v1406_v31  ;;  %v1152_v36 = vadd.f32 %v3109_v32, %v1136_v33  ;;  %v1104_v37 = vpop.f32.mrb[37].mxu1  ;;  %v1645_v10 = vld [vmem:[#allocation3 + $0x10] sm:$0xff] }
 0x17c   :  { %1421 = vst.msk [vmem:[#allocation3 + $0x30] sm:$0xff] %vm374_vm1, %v1405_v28  ;;  %v1151_v40 = vadd.f32 %v1135_v38, %v1104_v37  ;;  %v1392_v41 = vld [vmem:[#allocation3 + $0x48] sm:$0xff] }
 0x17d   :  { %1168 = vst.msk [vmem:[#allocation3 + $0x68] sm:$0xff] %vm374_vm1, %v1152_v36  ;;  %v1408_v42 = vadd.f32 %v3131_v11, %v1392_v41  ;;  %v1391_v43 = vld [vmem:[#allocation3 + $0x40] sm:$0xff]  ;;  %v3140_v47 = vpop.f32.mrb[38].mxu0 }
 0x17e   :  { %1167 = vst.msk [vmem:[#allocation3 + $0x60] sm:$0xff] %vm374_vm1, %v1151_v40  ;;  %v1407_v44 = vadd.f32 %v1391_v43, %v1344_v15  ;;  %v3112_v45 = vpop.f32.mrb[38].mxu1  ;;  %v1374_v51 = vpop.f32.mrb[39].mxu0  ;;  %v1648_v18 = vld [vmem:[#allocation3 + $0x28] sm:$0xff] }
 0x17f   :  { %1424 = vst.msk [vmem:[#allocation3 + $0x48] sm:$0xff] %vm374_vm1, %v1408_v42  ;;  %v1154_v48 = vadd.f32 %v3112_v45, %v1138_v46  ;;  %v1114_v49 = vpop.f32.mrb[39].mxu1  ;;  %v1647_v22 = vld [vmem:[#allocation3 + $0x20] sm:$0xff] }
 0x180   :  { %1423 = vst.msk [vmem:[#allocation3 + $0x40] sm:$0xff] %vm374_vm1, %v1407_v44  ;;  %v1153_v52 = vadd.f32 %v1137_v50, %v1114_v49  ;;  %v1394_v53 = vld [vmem:[#allocation3 + $0x58] sm:$0xff] }
 0x181   :  { %1170 = vst.msk [vmem:[#allocation3 + $0x78] sm:$0xff] %vm374_vm1, %v1154_v48  ;;  %v1410_v54 = vadd.f32 %v3134_v23, %v1394_v53  ;;  %v1393_v55 = vld [vmem:[#allocation3 + $0x50] sm:$0xff]  ;;  %v3175_v59 = vpop.f32.mrb[40].mxu0 }
 0x182   :  { %1169 = vst.msk [vmem:[#allocation3 + $0x70] sm:$0xff] %vm374_vm1, %v1153_v52  ;;  %v1409_v56 = vadd.f32 %v1393_v55, %v1354_v27  ;;  %v3147_v57 = vpop.f32.mrb[40].mxu1  ;;  %v1824_v63 = vpop.f32.mrb[41].mxu0  ;;  %v1650_v31 = vld [vmem:[#allocation3 + $0x38] sm:$0xff] }
 0x183   :  { %1426 = vst.msk [vmem:[#allocation3 + $0x58] sm:$0xff] %vm374_vm1, %v1410_v54  ;;  %v1660_v60 = vadd.f32 %v3147_v57, %v1644_v58  ;;  %v1564_v61 = vpop.f32.mrb[41].mxu1  ;;  %v1649_v33 = vld [vmem:[#allocation3 + $0x30] sm:$0xff] }
 0x184   :  { %1425 = vst.msk [vmem:[#allocation3 + $0x50] sm:$0xff] %vm374_vm1, %v1409_v56  ;;  %v1396_v0 = vld [vmem:[#allocation3 + $0x68] sm:$0xff]  ;;  %v1659_v1 = vadd.f32 %v1643_v62, %v1564_v61 }
 0x185   :  { %1676 = vst.msk [vmem:[#allocation3 + $0x8] sm:$0xff] %vm374_vm1, %v1660_v60  ;;  %v1412_v2 = vadd.f32 %v3137_v35, %v1396_v0  ;;  %v1395_v3 = vld [vmem:[#allocation3 + $0x60] sm:$0xff]  ;;  %v3178_v7 = vpop.f32.mrb[42].mxu0 }
 0x186   :  { %1675 = vst.msk [vmem:[#allocation3] sm:$0xff] %vm374_vm1, %v1659_v1  ;;  %v1411_v4 = vadd.f32 %v1395_v3, %v1364_v39  ;;  %v3150_v5 = vpop.f32.mrb[42].mxu1  ;;  %v1834_v11 = vpop.f32.mrb[43].mxu0  ;;  %v1652_v42 = vld [vmem:[#allocation3 + $0x48] sm:$0xff] }
 0x187   :  { %1428 = vst.msk [vmem:[#allocation3 + $0x68] sm:$0xff] %vm374_vm1, %v1412_v2  ;;  %v1662_v8 = vadd.f32 %v3150_v5, %v1646_v6  ;;  %v1574_v9 = vpop.f32.mrb[43].mxu1  ;;  %v1651_v46 = vld [vmem:[#allocation3 + $0x40] sm:$0xff] }
 0x188   :  { %1427 = vst.msk [vmem:[#allocation3 + $0x60] sm:$0xff] %vm374_vm1, %v1411_v4  ;;  %v1398_v12 = vld [vmem:[#allocation3 + $0x78] sm:$0xff]  ;;  %v1661_v13 = vadd.f32 %v1645_v10, %v1574_v9 }
 0x189   :  { %1678 = vst.msk [vmem:[#allocation3 + $0x18] sm:$0xff] %vm374_vm1, %v1662_v8  ;;  %v1414_v14 = vadd.f32 %v3140_v47, %v1398_v12  ;;  %v1397_v15 = vld [vmem:[#allocation3 + $0x70] sm:$0xff]  ;;  %v3181_v19 = vpop.f32.mrb[44].mxu0 }
 0x18a   :  { %1677 = vst.msk [vmem:[#allocation3 + $0x10] sm:$0xff] %vm374_vm1, %v1661_v13  ;;  %v1413_v16 = vadd.f32 %v1397_v15, %v1374_v51  ;;  %v3153_v17 = vpop.f32.mrb[44].mxu1  ;;  %v1844_v23 = vpop.f32.mrb[45].mxu0  ;;  %v1654_v54 = vld [vmem:[#allocation3 + $0x58] sm:$0xff] }
 0x18b   :  { %1430 = vst.msk [vmem:[#allocation3 + $0x78] sm:$0xff] %vm374_vm1, %v1414_v14  ;;  %v1664_v20 = vadd.f32 %v3153_v17, %v1648_v18  ;;  %v1584_v21 = vpop.f32.mrb[45].mxu1  ;;  %v1653_v58 = vld [vmem:[#allocation3 + $0x50] sm:$0xff] }
 0x18c   :  { %1429 = vst.msk [vmem:[#allocation3 + $0x70] sm:$0xff] %vm374_vm1, %v1413_v16  ;;  %v1663_v24 = vadd.f32 %v1647_v22, %v1584_v21  ;;  %v1904_v25 = vld [vmem:[#allocation3 + $0x8] sm:$0xff] }
 0x18d   :  { %1680 = vst.msk [vmem:[#allocation3 + $0x28] sm:$0xff] %vm374_vm1, %v1664_v20  ;;  %v1920_v26 = vadd.f32 %v3175_v59, %v1904_v25  ;;  %v1903_v27 = vld [vmem:[#allocation3] sm:$0xff]  ;;  %v3184_v34 = vpop.f32.mrb[46].mxu0 }
 0x18e   :  { %1679 = vst.msk [vmem:[#allocation3 + $0x20] sm:$0xff] %vm374_vm1, %v1663_v24  ;;  %v1919_v29 = vadd.f32 %v1903_v27, %v1824_v63  ;;  %v3156_v30 = vpop.f32.mrb[46].mxu1  ;;  %v1854_v35 = vpop.f32.mrb[47].mxu0  ;;  %v1656_v2 = vld [vmem:[#allocation3 + $0x68] sm:$0xff] }
 0x18f   :  { %1936 = vst.msk [vmem:[#allocation3 + $0x8] sm:$0xff] %vm374_vm1, %v1920_v26  ;;  %v1666_v28 = vadd.f32 %v3156_v30, %v1650_v31  ;;  %v1594_v32 = vpop.f32.mrb[47].mxu1  ;;  %v1655_v6 = vld [vmem:[#allocation3 + $0x60] sm:$0xff] }
 0x190   :  { %1935 = vst.msk [vmem:[#allocation3] sm:$0xff] %vm374_vm1, %v1919_v29  ;;  %v1665_v36 = vadd.f32 %v1649_v33, %v1594_v32  ;;  %v1906_v37 = vld [vmem:[#allocation3 + $0x18] sm:$0xff] }
 0x191   :  { %1682 = vst.msk [vmem:[#allocation3 + $0x38] sm:$0xff] %vm374_vm1, %v1666_v28  ;;  %v1922_v38 = vadd.f32 %v3178_v7, %v1906_v37  ;;  %v1905_v39 = vld [vmem:[#allocation3 + $0x10] sm:$0xff]  ;;  %v3187_v43 = vpop.f32.mrb[48].mxu0 }
 0x192   :  { %1681 = vst.msk [vmem:[#allocation3 + $0x30] sm:$0xff] %vm374_vm1, %v1665_v36  ;;  %v1921_v40 = vadd.f32 %v1905_v39, %v1834_v11  ;;  %v3159_v41 = vpop.f32.mrb[48].mxu1  ;;  %v1864_v47 = vpop.f32.mrb[49].mxu0  ;;  %v1658_v14 = vld [vmem:[#allocation3 + $0x78] sm:$0xff] }
 0x193   :  { %1938 = vst.msk [vmem:[#allocation3 + $0x18] sm:$0xff] %vm374_vm1, %v1922_v38  ;;  %v1668_v44 = vadd.f32 %v3159_v41, %v1652_v42  ;;  %v1604_v45 = vpop.f32.mrb[49].mxu1  ;;  %v1657_v18 = vld [vmem:[#allocation3 + $0x70] sm:$0xff] }
 0x194   :  { %1937 = vst.msk [vmem:[#allocation3 + $0x10] sm:$0xff] %vm374_vm1, %v1921_v40  ;;  %v1667_v48 = vadd.f32 %v1651_v46, %v1604_v45  ;;  %v1908_v49 = vld [vmem:[#allocation3 + $0x28] sm:$0xff] }
 0x195   :  { %1684 = vst.msk [vmem:[#allocation3 + $0x48] sm:$0xff] %vm374_vm1, %v1668_v44  ;;  %v1924_v50 = vadd.f32 %v3181_v19, %v1908_v49  ;;  %v1907_v51 = vld [vmem:[#allocation3 + $0x20] sm:$0xff]  ;;  %v3190_v55 = vpop.f32.mrb[50].mxu0 }
 0x196   :  { %1683 = vst.msk [vmem:[#allocation3 + $0x40] sm:$0xff] %vm374_vm1, %v1667_v48  ;;  %v1923_v52 = vadd.f32 %v1907_v51, %v1844_v23  ;;  %v3162_v53 = vpop.f32.mrb[50].mxu1  ;;  %v1874_v59 = vpop.f32.mrb[51].mxu0  ;;  %v2164_v26 = vld [vmem:[#allocation3 + $0x8] sm:$0xff] }
 0x197   :  { %1940 = vst.msk [vmem:[#allocation3 + $0x28] sm:$0xff] %vm374_vm1, %v1924_v50  ;;  %v1670_v56 = vadd.f32 %v3162_v53, %v1654_v54  ;;  %v1614_v57 = vpop.f32.mrb[51].mxu1  ;;  %v2163_v31 = vld [vmem:[#allocation3] sm:$0xff] }
 0x198   :  { %1939 = vst.msk [vmem:[#allocation3 + $0x20] sm:$0xff] %vm374_vm1, %v1923_v52  ;;  %v1669_v60 = vadd.f32 %v1653_v58, %v1614_v57  ;;  %v1910_v61 = vld [vmem:[#allocation3 + $0x38] sm:$0xff]  ;;  %v2526_v58 = vlaneseq }
 0x199   :  { %1686 = vst.msk [vmem:[#allocation3 + $0x58] sm:$0xff] %vm374_vm1, %v1670_v56  ;;  %v1926_v62 = vadd.f32 %v3184_v34, %v1910_v61  ;;  %v1909_v63 = vld [vmem:[#allocation3 + $0x30] sm:$0xff]  ;;  %v3193_v3 = vpop.f32.mrb[52].mxu0 }
 0x19a   :  { %1685 = vst.msk [vmem:[#allocation3 + $0x50] sm:$0xff] %vm374_vm1, %v1669_v60  ;;  %v1925_v0 = vadd.f32 %v1909_v63, %v1854_v35  ;;  %v3165_v1 = vpop.f32.mrb[52].mxu1  ;;  %v1884_v7 = vpop.f32.mrb[53].mxu0  ;;  %v2166_v38 = vld [vmem:[#allocation3 + $0x18] sm:$0xff] }
 0x19b   :  { %1942 = vst.msk [vmem:[#allocation3 + $0x38] sm:$0xff] %vm374_vm1, %v1926_v62  ;;  %v1672_v4 = vadd.f32 %v3165_v1, %v1656_v2  ;;  %v1624_v5 = vpop.f32.mrb[53].mxu1  ;;  %v2165_v42 = vld [vmem:[#allocation3 + $0x10] sm:$0xff] }
 0x19c   :  { %1941 = vst.msk [vmem:[#allocation3 + $0x30] sm:$0xff] %vm374_vm1, %v1925_v0  ;;  %v1671_v8 = vadd.f32 %v1655_v6, %v1624_v5  ;;  %v1912_v9 = vld [vmem:[#allocation3 + $0x48] sm:$0xff] }
 0x19d   :  { %1688 = vst.msk [vmem:[#allocation3 + $0x68] sm:$0xff] %vm374_vm1, %v1672_v4  ;;  %v1928_v10 = vadd.f32 %v3187_v43, %v1912_v9  ;;  %v1911_v11 = vld [vmem:[#allocation3 + $0x40] sm:$0xff]  ;;  %v3196_v15 = vpop.f32.mrb[54].mxu0 }
 0x19e   :  { %1687 = vst.msk [vmem:[#allocation3 + $0x60] sm:$0xff] %vm374_vm1, %v1671_v8  ;;  %v1927_v12 = vadd.f32 %v1911_v11, %v1864_v47  ;;  %v3168_v13 = vpop.f32.mrb[54].mxu1  ;;  %v1894_v19 = vpop.f32.mrb[55].mxu0  ;;  %v2168_v50 = vld [vmem:[#allocation3 + $0x28] sm:$0xff] }
 0x19f   :  { %1944 = vst.msk [vmem:[#allocation3 + $0x48] sm:$0xff] %vm374_vm1, %v1928_v10  ;;  %v1674_v16 = vadd.f32 %v3168_v13, %v1658_v14  ;;  %v1634_v17 = vpop.f32.mrb[55].mxu1  ;;  %v2167_v54 = vld [vmem:[#allocation3 + $0x20] sm:$0xff] }
 0x1a0   :  { %1943 = vst.msk [vmem:[#allocation3 + $0x40] sm:$0xff] %vm374_vm1, %v1927_v12  ;;  %v1673_v20 = vadd.f32 %v1657_v18, %v1634_v17  ;;  %v1914_v21 = vld [vmem:[#allocation3 + $0x58] sm:$0xff] }
 0x1a1   :  { %1690 = vst.msk [vmem:[#allocation3 + $0x78] sm:$0xff] %vm374_vm1, %v1674_v16  ;;  %v1930_v22 = vadd.f32 %v3190_v55, %v1914_v21  ;;  %v1913_v23 = vld [vmem:[#allocation3 + $0x50] sm:$0xff]  ;;  %v3231_v27 = vpop.f32.mrb[56].mxu0 }
 0x1a2   :  { %1689 = vst.msk [vmem:[#allocation3 + $0x70] sm:$0xff] %vm374_vm1, %v1673_v20  ;;  %v1929_v24 = vadd.f32 %v1913_v23, %v1874_v59  ;;  %v3203_v25 = vpop.f32.mrb[56].mxu1  ;;  %v2344_v34 = vpop.f32.mrb[57].mxu0  ;;  %v2170_v63 = vld [vmem:[#allocation3 + $0x38] sm:$0xff]  ;;  %v4073_v21 = vld [vmem:[%s4172_s4] ss:$0 sm:$0xff] }
 0x1a3   :  { %1946 = vst.msk [vmem:[#allocation3 + $0x58] sm:$0xff] %vm374_vm1, %v1930_v22  ;;  %v2180_v29 = vadd.f32 %v3203_v25, %v2164_v26  ;;  %v2084_v30 = vpop.f32.mrb[57].mxu1  ;;  %s3431_s4 = smov [#allocation12]  }
 0x1a4   :  { %1945 = vst.msk [vmem:[#allocation3 + $0x50] sm:$0xff] %vm374_vm1, %v1929_v24  ;;  %v1916_v28 = vld [vmem:[#allocation3 + $0x68] sm:$0xff]  ;;  %v2179_v32 = vadd.f32 %v2163_v31, %v2084_v30  ;;  %v2601_v24 = vpop.permute.xlu0 %2600  ;;  %s2668_s2 = sshll.u32 %s3431_s4, 4  ;;  %s2669_s2 = int_to_ptr.vmem [resolvable:$true] %s2668_s2 }
 0x1a5   :  { %2196 = vst.msk [vmem:[#allocation3 + $0x8] sm:$0xff] %vm374_vm1, %v2180_v29  ;;  %v1932_v33 = vadd.f32 %v3193_v3, %v1916_v28  ;;  %v1915_v35 = vld [vmem:[#allocation3 + $0x60] sm:$0xff]  ;;  %v3234_v39 = vpop.f32.mrb[58].mxu0  ;;  %v2169_v3 = vld [vmem:[#allocation3 + $0x30] sm:$0xff]  ;;  %s3393_s16 = scalar_lea.vmem %s2669_s2, 2048  ;;  %p3398_p11 = scmp.lt.s32.totalorder %s2669_s2, %s2669_s2 }
 0x1a6   :  { %2195 = vst.msk [vmem:[#allocation3] sm:$0xff] %vm374_vm1, %v2179_v32  ;;  %v1931_v36 = vadd.f32 %v1915_v35, %v1884_v7  ;;  %v3206_v37 = vpop.f32.mrb[58].mxu1  ;;  %v2354_v43 = vpop.f32.mrb[59].mxu0  ;;  %v2527_v7 = vshrl.u32 %v2526_v58, 7  ;;  %v2172_v12 = vld [vmem:[#allocation3 + $0x48] sm:$0xff]  ;;  %p3394_p10 = scmp.ne.s32.totalorder %s2669_s2, %s3393_s16  ;;  %p3399_p12 = scmp.lt.s32.totalorder %s3393_s16, %s3393_s16 }
 0x1a7   :  { %1948 = vst.msk [vmem:[#allocation3 + $0x68] sm:$0xff] %vm374_vm1, %v1932_v33  ;;  %v2182_v40 = vadd.f32 %v3206_v37, %v2166_v38  ;;  %v2094_v41 = vpop.f32.mrb[59].mxu1  ;;  %v2171_v16 = vld [vmem:[#allocation3 + $0x40] sm:$0xff] }
 0x1a8   :  { %1947 = vst.msk [vmem:[#allocation3 + $0x60] sm:$0xff] %vm374_vm1, %v1931_v36  ;;  %v1918_v44 = vld [vmem:[#allocation3 + $0x78] sm:$0xff]  ;;  %v2181_v45 = vadd.f32 %v2165_v42, %v2094_v41  ;;  %v4068_v20 = vadd.s32 8, %v2527_v7  ;;  %p3400_p13 = por %p3399_p12, %p3398_p11 }
 0x1a9   :  { %2198 = vst.msk [vmem:[#allocation3 + $0x18] sm:$0xff] %vm374_vm1, %v2182_v40  ;;  %v1934_v46 = vadd.f32 %v3196_v15, %v1918_v44  ;;  %v1917_v47 = vld [vmem:[#allocation3 + $0x70] sm:$0xff]  ;;  %v3237_v51 = vpop.f32.mrb[60].mxu0 }
 0x1aa   :  { %2197 = vst.msk [vmem:[#allocation3 + $0x10] sm:$0xff] %vm374_vm1, %v2181_v45  ;;  %v1933_v48 = vadd.f32 %v1917_v47, %v1894_v19  ;;  %v3209_v49 = vpop.f32.mrb[60].mxu1  ;;  %v2364_v55 = vpop.f32.mrb[61].mxu0  ;;  %vm2530_vm2 = vcmp.lt.s32.totalorder %v4068_v20, 12  ;;  %p3401_p0 = pnand %p3400_p13, %p3394_p10 }
 0x1ab   :  { %1950 = vst.msk [vmem:[#allocation3 + $0x78] sm:$0xff] %vm374_vm1, %v1934_v46  ;;  %v2184_v52 = vadd.f32 %v3209_v49, %v2168_v50  ;;  %v2104_v53 = vpop.f32.mrb[61].mxu1  ;;  %v2173_v28 = vld [vmem:[#allocation3 + $0x50] sm:$0xff] }
 0x1ac   :  { %1949 = vst.msk [vmem:[#allocation3 + $0x70] sm:$0xff] %vm374_vm1, %v1933_v48  ;;  %v2183_v56 = vadd.f32 %v2167_v54, %v2104_v53  ;;  %v2424_v57 = vld [vmem:[#allocation3 + $0x8] sm:$0xff] }
 0x1ad   :  { %2200 = vst.msk [vmem:[#allocation3 + $0x28] sm:$0xff] %vm374_vm1, %v2184_v52  ;;  %v2440_v59 = vadd.f32 %v3231_v27, %v2424_v57  ;;  %v2423_v60 = vld [vmem:[#allocation3] sm:$0xff]  ;;  %v3240_v0 = vpop.f32.mrb[62].mxu0  ;;  %v2174_v27 = vld [vmem:[#allocation3 + $0x58] sm:$0xff] }
 0x1ae   :  { %2199 = vst.msk [vmem:[#allocation3 + $0x20] sm:$0xff] %vm374_vm1, %v2183_v56  ;;  %v2439_v61 = vadd.f32 %v2423_v60, %v2344_v34  ;;  %v3212_v62 = vpop.f32.mrb[62].mxu1  ;;  %v2374_v4 = vpop.f32.mrb[63].mxu0  ;;  %v2176_v44 = vld [vmem:[#allocation3 + $0x68] sm:$0xff] }
 0x1af   :  { %2456 = vst.msk [vmem:[#allocation3 + $0x8] sm:$0xff] %vm374_vm1, %v2440_v59  ;;  %v2186_v1 = vadd.f32 %v3212_v62, %v2170_v63  ;;  %v2114_v2 = vpop.f32.mrb[63].mxu1  ;;  %v2605_v62 = vpop.permute.xlu0 %2604 }
 0x1b0   :  { %2455 = vst.msk [vmem:[#allocation3] sm:$0xff] %vm374_vm1, %v2439_v61  ;;  %v2185_v5 = vadd.f32 %v2169_v3, %v2114_v2  ;;  %v2426_v6 = vld [vmem:[#allocation3 + $0x18] sm:$0xff] }
 0x1b1   :  { %2202 = vst.msk [vmem:[#allocation3 + $0x38] sm:$0xff] %vm374_vm1, %v2186_v1  ;;  %v2442_v8 = vadd.f32 %v3234_v39, %v2426_v6  ;;  %v2425_v9 = vld [vmem:[#allocation3 + $0x10] sm:$0xff]  ;;  %v3243_v13 = vpop.f32.mrb[64].mxu0 }
 0x1b2   :  { %2201 = vst.msk [vmem:[#allocation3 + $0x30] sm:$0xff] %vm374_vm1, %v2185_v5  ;;  %v2441_v10 = vadd.f32 %v2425_v9, %v2354_v43  ;;  %v3215_v11 = vpop.f32.mrb[64].mxu1  ;;  %v2384_v17 = vpop.f32.mrb[65].mxu0  ;;  %v2178_v2 = vld [vmem:[#allocation3 + $0x78] sm:$0xff] }
 0x1b3   :  { %2458 = vst.msk [vmem:[#allocation3 + $0x18] sm:$0xff] %vm374_vm1, %v2442_v8  ;;  %v2188_v14 = vadd.f32 %v3215_v11, %v2172_v12  ;;  %v2124_v15 = vpop.f32.mrb[65].mxu1  ;;  %v2177_v11 = vld [vmem:[#allocation3 + $0x70] sm:$0xff] }
 0x1b4   :  { %2457 = vst.msk [vmem:[#allocation3 + $0x10] sm:$0xff] %vm374_vm1, %v2441_v10  ;;  %v2187_v18 = vadd.f32 %v2171_v16, %v2124_v15  ;;  %v2428_v19 = vld [vmem:[#allocation3 + $0x28] sm:$0xff] }
 0x1b5   :  { %2204 = vst.msk [vmem:[#allocation3 + $0x48] sm:$0xff] %vm374_vm1, %v2188_v14  ;;  %v2444_v22 = vadd.f32 %v3237_v51, %v2428_v19  ;;  %v2427_v23 = vld [vmem:[#allocation3 + $0x20] sm:$0xff]  ;;  %v4077_v30 = vpop.f32.mrb[66].mxu0 }
 0x1b6   :  { %2203 = vst.msk [vmem:[#allocation3 + $0x40] sm:$0xff] %vm374_vm1, %v2187_v18  ;;  %v2443_v25 = vadd.f32 %v2427_v23, %v2364_v55  ;;  %v3218_v26 = vpop.f32.mrb[66].mxu1  ;;  %v2472_v29 = vld [vmem:[#allocation3 + $0x8] sm:$0xff]  ;;  %v4081_v35 = vpop.f32.mrb[67].mxu0  ;;  %v2175_v51 = vld [vmem:[#allocation3 + $0x60] sm:$0xff] }
 0x1b7   :  { %2460 = vst.msk [vmem:[#allocation3 + $0x28] sm:$0xff] %vm374_vm1, %v2444_v22  ;;  %v2190_v31 = vadd.f32 %v3218_v26, %v2174_v27  ;;  %v2134_v34 = vpop.f32.mrb[67].mxu1  ;;  %v2471_v32 = vld [vmem:[#allocation3] sm:$0xff]  ;;  %v2495_v33 = vadd.f32 %v4073_v21, %v2472_v29  ;;  %v2609_v18 = vpop.permute.xlu1 %2608 }
 0x1b8   :  { %2459 = vst.msk [vmem:[#allocation3 + $0x20] sm:$0xff] %vm374_vm1, %v2443_v25  ;;  %v2189_v36 = vadd.f32 %v2173_v28, %v2134_v34  ;;  %v2430_v37 = vld [vmem:[#allocation3 + $0x38] sm:$0xff]  ;;  %v2494_v38 = vadd.f32 %v4073_v21, %v2471_v32 }
 0x1b9   :  { %2206 = vst.msk [vmem:[#allocation3 + $0x58] sm:$0xff] %vm374_vm1, %v2190_v31  ;;  %v2446_v39 = vadd.f32 %v3240_v0, %v2430_v37  ;;  %v2429_v40 = vld [vmem:[#allocation3 + $0x30] sm:$0xff]  ;;  %v2511_v41 = vmax.f32 %v2495_v33, 0.0  ;;  %v4088_v47 = vpop.f32.mrb[68].mxu0 }
 0x1ba   :  { %2205 = vst.msk [vmem:[#allocation3 + $0x50] sm:$0xff] %vm374_vm1, %v2189_v36  ;;  %v2445_v42 = vadd.f32 %v2429_v40, %v2374_v4  ;;  %v3221_v43 = vpop.f32.mrb[68].mxu1  ;;  %v2510_v45 = vmax.f32 %v2494_v38, 0.0  ;;  %v2474_v46 = vld [vmem:[#allocation3 + $0x18] sm:$0xff]  ;;  %v2404_v54 = vpop.f32.mrb[69].mxu0 }
 0x1bb   :  { %2462 = vst.msk [vmem:[#allocation3 + $0x38] sm:$0xff] %vm374_vm1, %v2446_v39  ;;  %v2192_v48 = vadd.f32 %v3221_v43, %v2176_v44  ;;  %v2536_v49 = vsel %vm2530_vm2, %v2511_v41, 0.0  ;;  %v2144_v50 = vpop.f32.mrb[69].mxu1  ;;  %v2473_v52 = vld [vmem:[#allocation3 + $0x10] sm:$0xff]  ;;  %v2497_v53 = vadd.f32 %v4073_v21, %v2474_v46  ;;  %v2613_v40 = vpop.permute.xlu1 %2612 }
 0x1bc   :  { %2461 = vst.msk [vmem:[#allocation3 + $0x30] sm:$0xff] %vm374_vm1, %v2445_v42  ;;  %v2631_v55 = vmul.f32 %v2601_v24, %v2510_v45  ;;  %v2632_v56 = vmul.f32 %v2601_v24, %v2536_v49  ;;  %v2191_v57 = vadd.f32 %v2175_v51, %v2144_v50  ;;  %v2432_v58 = vld [vmem:[#allocation3 + $0x48] sm:$0xff]  ;;  %v2496_v59 = vadd.f32 %v4073_v21, %v2473_v52 }
 0x1bd   :  { %2208 = vst.msk [vmem:[#allocation3 + $0x68] sm:$0xff] %vm374_vm1, %v2192_v48  ;;  %v2448_v60 = vadd.f32 %v3243_v13, %v2432_v58  ;;  %v2431_v61 = vld [vmem:[#allocation3 + $0x40] sm:$0xff]  ;;  %v2513_v63 = vmax.f32 %v2497_v53, 0.0  ;;  %v3252_v5 = vpop.f32.mrb[70].mxu0 }
 0x1be   :  { %2647 = vst.msk [vmem:[#allocation12] sm:$0xff] %vm374_vm1, %v2631_v55  ;;  %2648 = vst.msk [vmem:[#allocation12 + $0x8] sm:$0xff] %vm374_vm1, %v2632_v56  ;;  %v2447_v0 = vadd.f32 %v2431_v61, %v2384_v17  ;;  %v3224_v1 = vpop.f32.mrb[70].mxu1  ;;  %v2476_v3 = vld [vmem:[#allocation3 + $0x28] sm:$0xff]  ;;  %v2512_v4 = vmax.f32 %v2496_v59, 0.0  ;;  %v2414_v12 = vpop.f32.mrb[71].mxu0 }
 0x1bf   :  { %2207 = vst.msk [vmem:[#allocation3 + $0x60] sm:$0xff] %vm374_vm1, %v2191_v57  ;;  %2464 = vst.msk [vmem:[#allocation3 + $0x48] sm:$0xff] %vm374_vm1, %v2448_v60  ;;  %v2194_v6 = vadd.f32 %v3224_v1, %v2178_v2  ;;  %v2475_v7 = vld [vmem:[#allocation3 + $0x20] sm:$0xff]  ;;  %v2499_v8 = vadd.f32 %v4073_v21, %v2476_v3  ;;  %v2538_v9 = vsel %vm2530_vm2, %v2513_v63, 0.0  ;;  %v2154_v10 = vpop.f32.mrb[71].mxu1  ;;  %v2617_v56 = vpop.permute.xlu0 %2616 }
 0x1c0   :  { %2463 = vst.msk [vmem:[#allocation3 + $0x40] sm:$0xff] %vm374_vm1, %v2447_v0  ;;  %v2498_v13 = vadd.f32 %v4073_v21, %v2475_v7  ;;  %v2633_v14 = vmul.f32 %v2605_v62, %v2512_v4  ;;  %v2634_v15 = vmul.f32 %v2605_v62, %v2538_v9  ;;  %v2193_v16 = vadd.f32 %v2177_v11, %v2154_v10  ;;  %v2434_v17 = vld [vmem:[#allocation3 + $0x58] sm:$0xff]  ;;  %v2621_v0 = vpop.permute.xlu1 %2620 }
 0x1c1   :  { %2210 = vst.msk [vmem:[#allocation3 + $0x78] sm:$0xff] %vm374_vm1, %v2194_v6  ;;  %v2515_v19 = vmax.f32 %v2499_v8, 0.0  ;;  %v2450_v22 = vadd.f32 %v4077_v30, %v2434_v17  ;;  %v2433_v23 = vld [vmem:[#allocation3 + $0x50] sm:$0xff] }
 0x1c2   :  { %v2514_v24 = vmax.f32 %v2498_v13, 0.0  ;;  %2649 = vst.msk [vmem:[#allocation12 + $0x10] sm:$0xff] %vm374_vm1, %v2633_v14  ;;  %2650 = vst.msk [vmem:[#allocation12 + $0x18] sm:$0xff] %vm374_vm1, %v2634_v15  ;;  %v2449_v25 = vadd.f32 %v2433_v23, %v4081_v35  ;;  %v2478_v26 = vld [vmem:[#allocation3 + $0x38] sm:$0xff] }
 0x1c3   :  { %2209 = vst.msk [vmem:[#allocation3 + $0x70] sm:$0xff] %vm374_vm1, %v2193_v16  ;;  %v2540_v27 = vsel %vm2530_vm2, %v2515_v19, 0.0  ;;  %2466 = vst.msk [vmem:[#allocation3 + $0x58] sm:$0xff] %vm374_vm1, %v2450_v22  ;;  %v2477_v29 = vld [vmem:[#allocation3 + $0x30] sm:$0xff]  ;;  %v2501_v31 = vadd.f32 %v4073_v21, %v2478_v26 }
 0x1c4   :  { %v2635_v30 = vmul.f32 %v2609_v18, %v2514_v24  ;;  %v2636_v34 = vmul.f32 %v2609_v18, %v2540_v27  ;;  %2465 = vst.msk [vmem:[#allocation3 + $0x50] sm:$0xff] %vm374_vm1, %v2449_v25  ;;  %v2500_v28 = vadd.f32 %v4073_v21, %v2477_v29  ;;  %v2436_v32 = vld [vmem:[#allocation3 + $0x68] sm:$0xff]  ;;  %v2629_v19 = vpop.permute.xlu1 %2628 }
 0x1c5   :  { %v2517_v33 = vmax.f32 %v2501_v31, 0.0  ;;  %v2452_v36 = vadd.f32 %v4088_v47, %v2436_v32 }
 0x1c6   :  { %v2435_v35 = vld [vmem:[#allocation3 + $0x60] sm:$0xff]  ;;  %2651 = vst.msk [vmem:[#allocation12 + $0x20] sm:$0xff] %vm374_vm1, %v2635_v30  ;;  %2652 = vst.msk [vmem:[#allocation12 + $0x28] sm:$0xff] %vm374_vm1, %v2636_v34  ;;  %v2516_v37 = vmax.f32 %v2500_v28, 0.0  ;;  %v2480_v39 = vld [vmem:[#allocation3 + $0x48] sm:$0xff] }
 0x1c7   :  { %v2451_v38 = vadd.f32 %v2435_v35, %v2404_v54  ;;  %v2542_v41 = vsel %vm2530_vm2, %v2517_v33, 0.0  ;;  %2468 = vst.msk [vmem:[#allocation3 + $0x68] sm:$0xff] %vm374_vm1, %v2452_v36  ;;  %v2479_v42 = vld [vmem:[#allocation3 + $0x40] sm:$0xff]  ;;  %v2503_v43 = vadd.f32 %v4073_v21, %v2480_v39 }
 0x1c8   :  { %v2637_v44 = vmul.f32 %v2613_v40, %v2516_v37  ;;  %v2638_v45 = vmul.f32 %v2613_v40, %v2542_v41  ;;  %v2502_v46 = vadd.f32 %v4073_v21, %v2479_v42  ;;  %v2438_v47 = vld [vmem:[#allocation3 + $0x78] sm:$0xff] }
 0x1c9   :  { %2467 = vst.msk [vmem:[#allocation3 + $0x60] sm:$0xff] %vm374_vm1, %v2451_v38  ;;  %v2519_v48 = vmax.f32 %v2503_v43, 0.0  ;;  %v2454_v49 = vadd.f32 %v3252_v5, %v2438_v47 }
 0x1ca   :  { %v2437_v50 = vld [vmem:[#allocation3 + $0x70] sm:$0xff]  ;;  %2653 = vst.msk [vmem:[#allocation12 + $0x30] sm:$0xff] %vm374_vm1, %v2637_v44  ;;  %2654 = vst.msk [vmem:[#allocation12 + $0x38] sm:$0xff] %vm374_vm1, %v2638_v45  ;;  %v2482_v51 = vld [vmem:[#allocation3 + $0x58] sm:$0xff]  ;;  %v2518_v52 = vmax.f32 %v2502_v46, 0.0 }
 0x1cb   :  { %v2453_v53 = vadd.f32 %v2437_v50, %v2414_v12  ;;  %v2481_v54 = vld [vmem:[#allocation3 + $0x50] sm:$0xff]  ;;  %v2505_v55 = vadd.f32 %v4073_v21, %v2482_v51  ;;  %v2544_v57 = vsel %vm2530_vm2, %v2519_v48, 0.0  ;;  %2470 = vst.msk [vmem:[#allocation3 + $0x78] sm:$0xff] %vm374_vm1, %v2454_v49  ;;  %v2625_v12 = vpop.permute.xlu0 %2624 }
 0x1cc   :  { %v2504_v58 = vadd.f32 %v4073_v21, %v2481_v54  ;;  %v2639_v59 = vmul.f32 %v2617_v56, %v2518_v52  ;;  %v2640_v60 = vmul.f32 %v2617_v56, %v2544_v57 }
 0x1cd   :  { %2469 = vst.msk [vmem:[#allocation3 + $0x70] sm:$0xff] %vm374_vm1, %v2453_v53  ;;  %v2521_v61 = vmax.f32 %v2505_v55, 0.0 }
 0x1ce   :  { %v2520_v62 = vmax.f32 %v2504_v58, 0.0  ;;  %2655 = vst.msk [vmem:[#allocation12 + $0x40] sm:$0xff] %vm374_vm1, %v2639_v59  ;;  %2656 = vst.msk [vmem:[#allocation12 + $0x48] sm:$0xff] %vm374_vm1, %v2640_v60  ;;  %v2484_v63 = vld [vmem:[#allocation3 + $0x68] sm:$0xff] }
 0x1cf   :  { %v2546_v1 = vsel %vm2530_vm2, %v2521_v61, 0.0  ;;  %v2507_v3 = vadd.f32 %v4073_v21, %v2484_v63 }
 0x1d0   :  { %v2483_v2 = vld [vmem:[#allocation3 + $0x60] sm:$0xff]  ;;  %v2641_v4 = vmul.f32 %v2621_v0, %v2520_v62  ;;  %v2642_v5 = vmul.f32 %v2621_v0, %v2546_v1 }
 0x1d1   :  { %v2506_v6 = vadd.f32 %v4073_v21, %v2483_v2  ;;  %v2523_v7 = vmax.f32 %v2507_v3, 0.0 }
 0x1d2   :  { %2657 = vst.msk [vmem:[#allocation12 + $0x50] sm:$0xff] %vm374_vm1, %v2641_v4  ;;  %2658 = vst.msk [vmem:[#allocation12 + $0x58] sm:$0xff] %vm374_vm1, %v2642_v5  ;;  %v2486_v8 = vld [vmem:[#allocation3 + $0x78] sm:$0xff] }
 0x1d3   :  { %v2522_v9 = vmax.f32 %v2506_v6, 0.0  ;;  %v2509_v11 = vadd.f32 %v4073_v21, %v2486_v8  ;;  %v2548_v13 = vsel %vm2530_vm2, %v2523_v7, 0.0 }
 0x1d4   :  { %v2485_v10 = vld [vmem:[#allocation3 + $0x70] sm:$0xff]  ;;  %v2644_v16 = vmul.f32 %v2625_v12, %v2548_v13 }
 0x1d5   :  { %v2508_v14 = vadd.f32 %v4073_v21, %v2485_v10  ;;  %v2643_v15 = vmul.f32 %v2625_v12, %v2522_v9  ;;  %v2525_v17 = vmax.f32 %v2509_v11, 0.0 }
 0x1d6   :  { %2660 = vst.msk [vmem:[#allocation12 + $0x68] sm:$0xff] %vm374_vm1, %v2644_v16 }
 0x1d7   :  { %v2524_v18 = vmax.f32 %v2508_v14, 0.0  ;;  %2659 = vst.msk [vmem:[#allocation12 + $0x60] sm:$0xff] %vm374_vm1, %v2643_v15  ;;  %v2550_v22 = vsel %vm2530_vm2, %v2525_v17, 0.0 }
 0x1d8   :  { %v2646_v24 = vmul.f32 %v2629_v19, %v2550_v22 }
 0x1d9   :  { %v2645_v23 = vmul.f32 %v2629_v19, %v2524_v18 }
 0x1da   :  { %2662 = vst.msk [vmem:[#allocation12 + $0x78] sm:$0xff] %vm374_vm1, %v2646_v24 }
 0x1db   :  { %2661 = vst.msk [vmem:[#allocation12 + $0x70] sm:$0xff] %vm374_vm1, %v2645_v23 }
 0x1dc   :  { %3404 = shalt.err (!%p3401_p0)
}
 0x1dd   :  { %s3405_s19 = scalar_lea.hbm %s4174_s6, 2048 }
 0x1de   :  { %p3406_p1 = scmp.ne.s32.totalorder %s4174_s6, %s3405_s19  ;;  %p3409_p2 = scmp.lt.u32.totalorder %s3405_s19, %s4174_s6 }
 0x1e0   :  { %p3411_p3 = pnand %p3409_p2, %p3406_p1 }
 0x1e2   :  { %3414 = shalt.err (!%p3411_p3)
}
 0x1e3   :  { %2674 = dma.vmem_to_hbm [thread:$0]  %s2669_s2, 2048, %s4174_s6, [#allocation6], %s3425_s12, %s3425_s12, %s3426_s13  }
 0x1e4   :  { %3421 = dma.done.wait [#allocation6], 2048  }
 0x1e5   :  { %3422 = vsyncadd [#allocation6], 4294965248 }
 0x1e6   :  { %2678 = vsyncpa [#allocation5], 1 }
 0x1e7   :  { %2679 = vsyncpa [#allocation8], 1 }
 0x1e8   :  { %2680 = vsyncpa [#allocation11], 1 }
 0x1e9   :  { %2681 = vsyncpa [#allocation6], 1 }

</bundles_post_ra>
